<compile_context>
chip_gen: v7x
topology: tpu7x:2x2x1
jax: 0.10.0
libtpu: 0.0.40
codegen_flags: <defaults>
</compile_context>

<pallas_src>
import functools
import math

import jax
import jax.numpy as jnp
from jax.experimental import pallas as pl
from jax.experimental.pallas import tpu as pltpu


VMEM_LIMIT_BYTES = 48 * 1024 * 1024


# ------------------------------- helpers -------------------------------------

def _row_tile(m, max_rows=512):
    """Row tile: full M if small, else a multiple of 8 (<= max_rows).
    v6e (128 MiB VMEM) can raise max_rows to 1024; keep <=512 on v7x."""
    if m <= max_rows:
        return m
    for t in range(max_rows, 7, -8):
        if m % t == 0:
            return t
    return max_rows  # ragged edge: Pallas pads reads / masks writes


def _q_tile(t, max_rows=256):
    """Query-row tile for attention; must divide T (q rows are in-VMEM slices
    of the resident qkv block, so no out-of-bounds reads are allowed)."""
    if t <= max_rows:
        return t
    for cand in range(max_rows, 7, -8):
        if t % cand == 0:
            return cand
    return t


def _spec(block_shape, index_map, *, single_buffer=False):
    """BlockSpec; constant-index (weight/bias) blocks are never re-fetched, so
    request single buffering to halve their VMEM footprint."""
    if single_buffer:
        try:
            return pl.BlockSpec(block_shape, index_map,
                                pipeline_mode=pl.Buffered(1))
        except Exception:  # jax version without pipeline_mode: default buffering
            pass
    return pl.BlockSpec(block_shape, index_map)


def _compiler_params(dims):
    return pltpu.CompilerParams(dimension_semantics=dims,
                                vmem_limit_bytes=VMEM_LIMIT_BYTES)


# ------------------------------- kernels -------------------------------------

def _ln_linear_kernel(x_ref, g_ref, b_ref, w_ref, bias_ref, o_ref):
    """out = LayerNorm(x) @ W + bias; LN stats f32, matmul bf16, f32 accumulate."""
    x = x_ref[...]                                      # (TM, E) f32
    mean = jnp.mean(x, axis=-1, keepdims=True)
    xc = x - mean
    var = jnp.mean(xc * xc, axis=-1, keepdims=True)
    y = xc * jax.lax.rsqrt(var + 1e-5) * g_ref[...] + b_ref[...]
    out = jnp.dot(y.astype(w_ref.dtype), w_ref[...],
                  preferred_element_type=jnp.float32) + bias_ref[...]
    o_ref[...] = out.astype(o_ref.dtype)


def _ffn_fused_kernel(x_ref, g_ref, b_ref, w1_ref, b1_ref, w2_ref, b2_ref,
                      o_ref):
    """out = x + relu(LayerNorm(x) @ W1 + b1) @ W2 + b2.

    The (TM, dim_ff) hidden activation stays in VMEM (no HBM round trip)."""
    x = x_ref[...]                                      # (TM, E) f32
    mean = jnp.mean(x, axis=-1, keepdims=True)
    xc = x - mean
    var = jnp.mean(xc * xc, axis=-1, keepdims=True)
    y = xc * jax.lax.rsqrt(var + 1e-5) * g_ref[...] + b_ref[...]
    h = jnp.dot(y.astype(w1_ref.dtype), w1_ref[...],
                preferred_element_type=jnp.float32) + b1_ref[...]
    h = jnp.maximum(h, 0.0).astype(w2_ref.dtype)        # bf16 hidden, VMEM only
    # TODO(synk): train-time dropout on the hidden activation not implemented.
    o_ref[...] = x + jnp.dot(h, w2_ref[...],
                             preferred_element_type=jnp.float32) + b2_ref[...]


def _rotary_attn_kernel(qkv_ref, res_ref, cos_ref, sin_ref, wo_ref, bo_ref,
                        o_ref, *, nhead, head_dim, tq, scale):
    """Fused rotary self-attention + out_proj + residual for one (batch, q-tile).

    qkv_ref: (1, T, 3E) bf16 fused projection (VMEM-resident across q-tiles).
    res_ref: (1, tq, E) f32 residual rows for this q tile.
    o_ref:   (1, tq, E) f32 lane-dense output = res + concat_heads(attn) @ W_out + b.
    """
    emb = nhead * head_dim
    half = head_dim // 2
    qi = pl.program_id(1)
    q_start = qi * tq
    if tq % 8 == 0:
        q_start = pl.multiple_of(q_start, 8)

    cos_k = cos_ref[...]                                # (T, half) f32
    sin_k = sin_ref[...]
    cos_q = cos_ref[pl.ds(q_start, tq), :]              # (tq, half) f32
    sin_q = sin_ref[pl.ds(q_start, tq), :]

    q_rows = qkv_ref[0, pl.ds(q_start, tq), :]          # (tq, 3E) bf16
    kv = qkv_ref[0]                                     # (T, 3E) bf16 (no f32 slab)

    acc = res_ref[0] + bo_ref[...]                      # (tq, E) f32

    # TODO(synk): heads remain a static loop; for very long T move heads to a
    #             grid axis and add flash-style KV tiling (online softmax).
    for h in range(nhead):
        q0 = h * head_dim
        k0 = emb + h * head_dim
        v0 = 2 * emb + h * head_dim

        # Fold 1/sqrt(D) into q (O(T*D) instead of O(T^2)); RoPE math in f32.
        q1 = q_rows[:, q0:q0 + half].astype(jnp.float32) * scale
        q2 = q_rows[:, q0 + half:q0 + head_dim].astype(jnp.float32) * scale
        k1 = kv[:, k0:k0 + half].astype(jnp.float32)
        k2 = kv[:, k0 + half:k0 + head_dim].astype(jnp.float32)
        v = kv[:, v0:v0 + head_dim]                     # (T, D) bf16

        # RoPE two-half algebra: rot(x) = (x1*c - x2*s, x2*c + x1*s)
        # (matches torch rotate_half with freqs repeated over both halves).
        qr = jnp.concatenate([q1 * cos_q - q2 * sin_q,
                              q2 * cos_q + q1 * sin_q], axis=-1)
        kr = jnp.concatenate([k1 * cos_k - k2 * sin_k,
                              k2 * cos_k + k1 * sin_k], axis=-1)

        # Single K=head_dim bf16 MXU matmul for the scores, f32 accumulation.
        s = jax.lax.dot_general(qr.astype(jnp.bfloat16),
                                kr.astype(jnp.bfloat16),
                                (((1,), (1,)), ((), ())),
                                preferred_element_type=jnp.float32)   # (tq, T)
        s = s - jnp.max(s, axis=-1, keepdims=True)
        p = jnp.exp(s)
        p = p * pl.reciprocal(jnp.sum(p, axis=-1, keepdims=True), approx=True)

        ctx = jnp.dot(p.astype(jnp.bfloat16), v,
                      preferred_element_type=jnp.float32)             # (tq, D)
        # Fused out_proj: per-head (D, E) weight slice accumulated into the
        # lane-dense (tq, E) f32 accumulator — no (N, H, T, D) intermediate.
        acc = acc + jnp.dot(ctx.astype(jnp.bfloat16),
                            wo_ref[q0:q0 + head_dim, :],
                            preferred_element_type=jnp.float32)

    o_ref[0] = acc


# --------------------------- kernel wrappers ----------------------------------

def _pallas_ln_linear(x, gamma, beta, w, bias, *, out_dtype=jnp.bfloat16,
                      max_rows=512):
    m, k = x.shape
    n_out = w.shape[1]
    tm = _row_tile(m, max_rows)
    return pl.pallas_call(
        _ln_linear_kernel,
        out_shape=jax.ShapeDtypeStruct((m, n_out), out_dtype),
        grid=(pl.cdiv(m, tm),),
        in_specs=[
            pl.BlockSpec((tm, k), lambda i: (i, 0)),
            _spec((1, k), lambda i: (0, 0), single_buffer=True),
            _spec((1, k), lambda i: (0, 0), single_buffer=True),
            _spec((k, n_out), lambda i: (0, 0), single_buffer=True),
            _spec((1, n_out), lambda i: (0, 0), single_buffer=True),
        ],
        out_specs=pl.BlockSpec((tm, n_out), lambda i: (i, 0)),
        compiler_params=_compiler_params(("parallel",)),
    )(x, gamma.reshape(1, k), beta.reshape(1, k), w, bias.reshape(1, n_out))


def _pallas_ffn_fused(x, gamma, beta, w1, b1, w2, b2, *, max_rows=512):
    m, e = x.shape
    f = w1.shape[1]
    tm = _row_tile(m, max_rows)
    return pl.pallas_call(
        _ffn_fused_kernel,
        out_shape=jax.ShapeDtypeStruct((m, e), jnp.float32),
        grid=(pl.cdiv(m, tm),),
        in_specs=[
            pl.BlockSpec((tm, e), lambda i: (i, 0)),
            _spec((1, e), lambda i: (0, 0), single_buffer=True),
            _spec((1, e), lambda i: (0, 0), single_buffer=True),
            _spec((e, f), lambda i: (0, 0), single_buffer=True),
            _spec((1, f), lambda i: (0, 0), single_buffer=True),
            _spec((f, e), lambda i: (0, 0), single_buffer=True),
            _spec((1, e), lambda i: (0, 0), single_buffer=True),
        ],
        out_specs=pl.BlockSpec((tm, e), lambda i: (i, 0)),
        compiler_params=_compiler_params(("parallel",)),
    )(x, gamma.reshape(1, e), beta.reshape(1, e),
      w1, b1.reshape(1, f), w2, b2.reshape(1, e))


def _pallas_rotary_attention(qkv, res, cos_half, sin_half, w_out, b_out, *,
                             nhead, head_dim, max_q_rows=256):
    n, t, three_e = qkv.shape
    e = nhead * head_dim
    half = head_dim // 2
    tq = _q_tile(t, max_q_rows)
    kern = functools.partial(_rotary_attn_kernel, nhead=nhead,
                             head_dim=head_dim, tq=tq,
                             scale=1.0 / math.sqrt(head_dim))
    return pl.pallas_call(
        kern,
        out_shape=jax.ShapeDtypeStruct((n, t, e), jnp.float32),
        grid=(n, t // tq),
        in_specs=[
            pl.BlockSpec((1, t, three_e), lambda b, q: (b, 0, 0)),   # resident over q
            pl.BlockSpec((1, tq, e), lambda b, q: (b, q, 0)),
            _spec((t, half), lambda b, q: (0, 0), single_buffer=True),
            _spec((t, half), lambda b, q: (0, 0), single_buffer=True),
            _spec((e, e), lambda b, q: (0, 0), single_buffer=True),
            _spec((1, e), lambda b, q: (0, 0), single_buffer=True),
        ],
        out_specs=pl.BlockSpec((1, tq, e), lambda b, q: (b, q, 0)),
        compiler_params=_compiler_params(("parallel", "parallel")),
    )(qkv, res, cos_half, sin_half, w_out, b_out.reshape(1, e))


# ----------------------------- parameter setup --------------------------------

def init_params(key, d_model, nhead, dim_feedforward):
    """Synthetic params matching RotaryTransformerEncoderLayer shapes.

    Matmul weights are stored transposed as (in, out) and cast to bf16;
    biases and LayerNorm affine params stay f32."""
    def linear(k, fan_in, fan_out):
        kw, kb = jax.random.split(k)
        limit = math.sqrt(6.0 / (fan_in + fan_out))
        w = jax.random.uniform(kw, (fan_in, fan_out), jnp.float32,
                               -limit, limit)
        bound = 1.0 / math.sqrt(fan_in)
        b = jax.random.uniform(kb, (fan_out,), jnp.float32, -bound, bound)
        return w.astype(jnp.bfloat16), b

    k1, k2, k3, k4 = jax.random.split(key, 4)
    in_proj_w, in_proj_b = linear(k1, d_model, 3 * d_model)
    out_proj_w, out_proj_b = linear(k2, d_model, d_model)
    ffn_w1, ffn_b1 = linear(k3, d_model, dim_feedforward)
    ffn_w2, ffn_b2 = linear(k4, dim_feedforward, d_model)
    return {
        "in_proj_w": in_proj_w, "in_proj_b": in_proj_b,
        "out_proj_w": out_proj_w, "out_proj_b": out_proj_b,
        "ln1_g": jnp.ones((d_model,), jnp.float32),
        "ln1_b": jnp.zeros((d_model,), jnp.float32),
        "ln2_g": jnp.ones((d_model,), jnp.float32),
        "ln2_b": jnp.zeros((d_model,), jnp.float32),
        "ffn_w1": ffn_w1, "ffn_b1": ffn_b1,
        "ffn_w2": ffn_w2, "ffn_b2": ffn_b2,
    }


# ------------------------------- forward pass ---------------------------------

def rotary_transformer_encoder_layer_forward(x, params, *, nhead):
    """x: (T, N, d_model) -> (T, N, d_model).  Pre-norm rotary encoder layer."""
    t_len, n_batch, d_model = x.shape
    head_dim = d_model // nhead
    m = n_batch * t_len

    # Single transpose to batch-major; transposed back once at the end.
    src = x.transpose(1, 0, 2).reshape(m, d_model)          # (N*T, E) f32

    # Rotary tables (same as RotaryAttention._compute_rotary_emb).
    inv_freq = 1.0 / (10000.0 ** (
        jnp.arange(0, head_dim, 2, dtype=jnp.float32) / head_dim))
    pos = jnp.arange(t_len, dtype=jnp.float32)
    freqs = jnp.einsum("i,j->ij", pos, inv_freq)             # (T, D/2)
    cos_half = jnp.cos(freqs)
    sin_half = jnp.sin(freqs)

    # --- attention block: LN1 -> in_proj, then fused RoPE attn + out_proj + res
    qkv = _pallas_ln_linear(src, params["ln1_g"], params["ln1_b"],
                            params["in_proj_w"], params["in_proj_b"])
    src = _pallas_rotary_attention(
        qkv.reshape(n_batch, t_len, 3 * d_model),
        src.reshape(n_batch, t_len, d_model),
        cos_half, sin_half, params["out_proj_w"], params["out_proj_b"],
        nhead=nhead, head_dim=head_dim)
    src = src.reshape(m, d_model)

    # --- FFN block, fully fused: LN2 -> W1 -> ReLU -> W2 + residual
    src = _pallas_ffn_fused(src, params["ln2_g"], params["ln2_b"],
                            params["ffn_w1"], params["ffn_b1"],
                            params["ffn_w2"], params["ffn_b2"])

    return src.reshape(n_batch, t_len, d_model).transpose(1, 0, 2)


# ----------------------------------- main --------------------------------------

if __name__ == "__main__":
    T, N = 8, 2
    d_model, nhead, dim_feedforward = 32, 4, 128

    key = jax.random.PRNGKey(0)
    pkey, xkey = jax.random.split(key)
    params = init_params(pkey, d_model, nhead, dim_feedforward)
    x = jax.random.normal(xkey, (T, N, d_model), jnp.float32)

    fwd = jax.jit(functools.partial(rotary_transformer_encoder_layer_forward,
                                    nhead=nhead))
    out = fwd(x, params)
    jax.block_until_ready(out)
    assert out.shape == (T, N, d_model), out.shape
    assert bool(jnp.all(jnp.isfinite(out)))
    print("KERNEL_OK")
</pallas_src>

<mosaic_0001>
module attributes {stable_mosaic.version = 11 : i64} {
  func.func @_ln_linear_kernel(%arg0: i32, %arg1: memref<16x32xf32, #tpu.memory_space<vmem>>, %arg2: memref<1x32xf32, #tpu.memory_space<vmem>>, %arg3: memref<1x32xf32, #tpu.memory_space<vmem>>, %arg4: memref<32x96xbf16, #tpu.memory_space<vmem>>, %arg5: memref<1x96xf32, #tpu.memory_space<vmem>>, %arg6: memref<16x96xbf16, #tpu.memory_space<vmem>>) attributes {dimension_semantics = [#tpu.dimension_semantics<parallel>], iteration_bounds = array<i64: 1>, scalar_prefetch = 0 : i64, scratch_operands = 0 : i64, tpu.core_type = #tpu.core_type<tc>, window_params = [{transform_indices = @transform_0, window_bounds = array<i64: 16, 32>}, {pipeline_mode = #tpu.pipeline_mode<synchronous>, transform_indices = @transform_1, window_bounds = array<i64: 1, 32>}, {pipeline_mode = #tpu.pipeline_mode<synchronous>, transform_indices = @transform_2, window_bounds = array<i64: 1, 32>}, {pipeline_mode = #tpu.pipeline_mode<synchronous>, transform_indices = @transform_3, window_bounds = array<i64: 32, 96>}, {pipeline_mode = #tpu.pipeline_mode<synchronous>, transform_indices = @transform_4, window_bounds = array<i64: 1, 96>}, {transform_indices = @transform_5, window_bounds = array<i64: 16, 96>}]} {
    %c0 = arith.constant 0 : index
    %c0_0 = arith.constant 0 : index
    %0 = vector.load %arg1[%c0, %c0_0] : memref<16x32xf32, #tpu.memory_space<vmem>>, vector<16x32xf32>
    %cst = arith.constant dense<0.000000e+00> : vector<16xf32>
    %1 = vector.multi_reduction <add>, %0, %cst [1] : vector<16x32xf32> to vector<16xf32>
    %2 = vector.shape_cast %1 : vector<16xf32> to vector<16x1xf32>
    %cst_1 = arith.constant 3.200000e+01 : f32
    %3 = vector.broadcast %cst_1 : f32 to vector<16x1xf32>
    %4 = arith.divf %2, %3 : vector<16x1xf32>
    %5 = vector.broadcast %4 : vector<16x1xf32> to vector<16x32xf32>
    %6 = arith.subf %0, %5 : vector<16x32xf32>
    %7 = arith.mulf %6, %6 : vector<16x32xf32>
    %cst_2 = arith.constant dense<0.000000e+00> : vector<16xf32>
    %8 = vector.multi_reduction <add>, %7, %cst_2 [1] : vector<16x32xf32> to vector<16xf32>
    %9 = vector.shape_cast %8 : vector<16xf32> to vector<16x1xf32>
    %cst_3 = arith.constant 3.200000e+01 : f32
    %10 = vector.broadcast %cst_3 : f32 to vector<16x1xf32>
    %11 = arith.divf %9, %10 : vector<16x1xf32>
    %cst_4 = arith.constant 9.99999974E-6 : f32
    %12 = vector.broadcast %cst_4 : f32 to vector<16x1xf32>
    %13 = arith.addf %11, %12 : vector<16x1xf32>
    %14 = math.rsqrt %13 : vector<16x1xf32>
    %15 = vector.broadcast %14 : vector<16x1xf32> to vector<16x32xf32>
    %16 = arith.mulf %6, %15 : vector<16x32xf32>
    %c0_5 = arith.constant 0 : index
    %c0_6 = arith.constant 0 : index
    %17 = vector.load %arg2[%c0_5, %c0_6] : memref<1x32xf32, #tpu.memory_space<vmem>>, vector<1x32xf32>
    %18 = vector.broadcast %17 : vector<1x32xf32> to vector<16x32xf32>
    %19 = arith.mulf %16, %18 : vector<16x32xf32>
    %c0_7 = arith.constant 0 : index
    %c0_8 = arith.constant 0 : index
    %20 = vector.load %arg3[%c0_7, %c0_8] : memref<1x32xf32, #tpu.memory_space<vmem>>, vector<1x32xf32>
    %21 = vector.broadcast %20 : vector<1x32xf32> to vector<16x32xf32>
    %22 = arith.addf %19, %21 : vector<16x32xf32>
    %23 = arith.truncf %22 : vector<16x32xf32> to vector<16x32xbf16>
    %c0_9 = arith.constant 0 : index
    %c0_10 = arith.constant 0 : index
    %24 = vector.load %arg4[%c0_9, %c0_10] : memref<32x96xbf16, #tpu.memory_space<vmem>>, vector<32x96xbf16>
    %cst_11 = arith.constant dense<0.000000e+00> : vector<16x96xf32>
    %25 = tpu.matmul %23, %24, %cst_11 {dimension_numbers = #tpu.dot_dimension_numbers<[1], [0], [0], [1], [0, 0, 1, 1], [], []>} : vector<16x32xbf16>, vector<32x96xbf16>, vector<16x96xf32> -> vector<16x96xf32>
    %c0_12 = arith.constant 0 : index
    %c0_13 = arith.constant 0 : index
    %26 = vector.load %arg5[%c0_12, %c0_13] : memref<1x96xf32, #tpu.memory_space<vmem>>, vector<1x96xf32>
    %27 = vector.broadcast %26 : vector<1x96xf32> to vector<16x96xf32>
    %28 = arith.addf %25, %27 : vector<16x96xf32>
    %29 = arith.truncf %28 : vector<16x96xf32> to vector<16x96xbf16>
    %c0_14 = arith.constant 0 : index
    %c0_15 = arith.constant 0 : index
    %30 = vector.load %arg6[%c0_14, %c0_15] : memref<16x96xbf16, #tpu.memory_space<vmem>>, vector<16x96xbf16>
    tpu.vector_store %arg6[%c0_14, %c0_15], %29 {strides = array<i32>} : memref<16x96xbf16, #tpu.memory_space<vmem>>, vector<16x96xbf16>,
    return
  }
  func.func @transform_0(%arg0: i32) -> (i32, i32) {
    %c0_i32 = arith.constant 0 : i32
    %c0_i32_0 = arith.constant 0 : i32
    return %arg0, %c0_i32 : i32, i32
  }
  func.func @transform_1(%arg0: i32) -> (i32, i32) {
    %c0_i32 = arith.constant 0 : i32
    %c0_i32_0 = arith.constant 0 : i32
    %c0_i32_1 = arith.constant 0 : i32
    return %c0_i32, %c0_i32_0 : i32, i32
  }
  func.func @transform_2(%arg0: i32) -> (i32, i32) {
    %c0_i32 = arith.constant 0 : i32
    %c0_i32_0 = arith.constant 0 : i32
    %c0_i32_1 = arith.constant 0 : i32
    return %c0_i32, %c0_i32_0 : i32, i32
  }
  func.func @transform_3(%arg0: i32) -> (i32, i32) {
    %c0_i32 = arith.constant 0 : i32
    %c0_i32_0 = arith.constant 0 : i32
    %c0_i32_1 = arith.constant 0 : i32
    return %c0_i32, %c0_i32_0 : i32, i32
  }
  func.func @transform_4(%arg0: i32) -> (i32, i32) {
    %c0_i32 = arith.constant 0 : i32
    %c0_i32_0 = arith.constant 0 : i32
    %c0_i32_1 = arith.constant 0 : i32
    return %c0_i32, %c0_i32_0 : i32, i32
  }
  func.func @transform_5(%arg0: i32) -> (i32, i32) {
    %c0_i32 = arith.constant 0 : i32
    %c0_i32_0 = arith.constant 0 : i32
    return %arg0, %c0_i32 : i32, i32
  }
}

module attributes {stable_mosaic.version = 11 : i64} {
  func.func @_ffn_fused_kernel(%arg0: i32, %arg1: memref<16x32xf32, #tpu.memory_space<vmem>>, %arg2: memref<1x32xf32, #tpu.memory_space<vmem>>, %arg3: memref<1x32xf32, #tpu.memory_space<vmem>>, %arg4: memref<32x128xbf16, #tpu.memory_space<vmem>>, %arg5: memref<1x128xf32, #tpu.memory_space<vmem>>, %arg6: memref<128x32xbf16, #tpu.memory_space<vmem>>, %arg7: memref<1x32xf32, #tpu.memory_space<vmem>>, %arg8: memref<16x32xf32, #tpu.memory_space<vmem>>) attributes {dimension_semantics = [#tpu.dimension_semantics<parallel>], iteration_bounds = array<i64: 1>, scalar_prefetch = 0 : i64, scratch_operands = 0 : i64, tpu.core_type = #tpu.core_type<tc>, window_params = [{transform_indices = @transform_0, window_bounds = array<i64: 16, 32>}, {pipeline_mode = #tpu.pipeline_mode<synchronous>, transform_indices = @transform_1, window_bounds = array<i64: 1, 32>}, {pipeline_mode = #tpu.pipeline_mode<synchronous>, transform_indices = @transform_2, window_bounds = array<i64: 1, 32>}, {pipeline_mode = #tpu.pipeline_mode<synchronous>, transform_indices = @transform_3, window_bounds = array<i64: 32, 128>}, {pipeline_mode = #tpu.pipeline_mode<synchronous>, transform_indices = @transform_4, window_bounds = array<i64: 1, 128>}, {pipeline_mode = #tpu.pipeline_mode<synchronous>, transform_indices = @transform_5, window_bounds = array<i64: 128, 32>}, {pipeline_mode = #tpu.pipeline_mode<synchronous>, transform_indices = @transform_6, window_bounds = array<i64: 1, 32>}, {transform_indices = @transform_7, window_bounds = array<i64: 16, 32>}]} {
    %c0 = arith.constant 0 : index
    %c0_0 = arith.constant 0 : index
    %0 = vector.load %arg1[%c0, %c0_0] : memref<16x32xf32, #tpu.memory_space<vmem>>, vector<16x32xf32>
    %cst = arith.constant dense<0.000000e+00> : vector<16xf32>
    %1 = vector.multi_reduction <add>, %0, %cst [1] : vector<16x32xf32> to vector<16xf32>
    %2 = vector.shape_cast %1 : vector<16xf32> to vector<16x1xf32>
    %cst_1 = arith.constant 3.200000e+01 : f32
    %3 = vector.broadcast %cst_1 : f32 to vector<16x1xf32>
    %4 = arith.divf %2, %3 : vector<16x1xf32>
    %5 = vector.broadcast %4 : vector<16x1xf32> to vector<16x32xf32>
    %6 = arith.subf %0, %5 : vector<16x32xf32>
    %7 = arith.mulf %6, %6 : vector<16x32xf32>
    %cst_2 = arith.constant dense<0.000000e+00> : vector<16xf32>
    %8 = vector.multi_reduction <add>, %7, %cst_2 [1] : vector<16x32xf32> to vector<16xf32>
    %9 = vector.shape_cast %8 : vector<16xf32> to vector<16x1xf32>
    %cst_3 = arith.constant 3.200000e+01 : f32
    %10 = vector.broadcast %cst_3 : f32 to vector<16x1xf32>
    %11 = arith.divf %9, %10 : vector<16x1xf32>
    %cst_4 = arith.constant 9.99999974E-6 : f32
    %12 = vector.broadcast %cst_4 : f32 to vector<16x1xf32>
    %13 = arith.addf %11, %12 : vector<16x1xf32>
    %14 = math.rsqrt %13 : vector<16x1xf32>
    %15 = vector.broadcast %14 : vector<16x1xf32> to vector<16x32xf32>
    %16 = arith.mulf %6, %15 : vector<16x32xf32>
    %c0_5 = arith.constant 0 : index
    %c0_6 = arith.constant 0 : index
    %17 = vector.load %arg2[%c0_5, %c0_6] : memref<1x32xf32, #tpu.memory_space<vmem>>, vector<1x32xf32>
    %18 = vector.broadcast %17 : vector<1x32xf32> to vector<16x32xf32>
    %19 = arith.mulf %16, %18 : vector<16x32xf32>
    %c0_7 = arith.constant 0 : index
    %c0_8 = arith.constant 0 : index
    %20 = vector.load %arg3[%c0_7, %c0_8] : memref<1x32xf32, #tpu.memory_space<vmem>>, vector<1x32xf32>
    %21 = vector.broadcast %20 : vector<1x32xf32> to vector<16x32xf32>
    %22 = arith.addf %19, %21 : vector<16x32xf32>
    %23 = arith.truncf %22 : vector<16x32xf32> to vector<16x32xbf16>
    %c0_9 = arith.constant 0 : index
    %c0_10 = arith.constant 0 : index
    %24 = vector.load %arg4[%c0_9, %c0_10] : memref<32x128xbf16, #tpu.memory_space<vmem>>, vector<32x128xbf16>
    %cst_11 = arith.constant dense<0.000000e+00> : vector<16x128xf32>
    %25 = tpu.matmul %23, %24, %cst_11 {dimension_numbers = #tpu.dot_dimension_numbers<[1], [0], [0], [1], [0, 0, 1, 1], [], []>} : vector<16x32xbf16>, vector<32x128xbf16>, vector<16x128xf32> -> vector<16x128xf32>
    %c0_12 = arith.constant 0 : index
    %c0_13 = arith.constant 0 : index
    %26 = vector.load %arg5[%c0_12, %c0_13] : memref<1x128xf32, #tpu.memory_space<vmem>>, vector<1x128xf32>
    %27 = vector.broadcast %26 : vector<1x128xf32> to vector<16x128xf32>
    %28 = arith.addf %25, %27 : vector<16x128xf32>
    %cst_14 = arith.constant 0.000000e+00 : f32
    %29 = vector.broadcast %cst_14 : f32 to vector<16x128xf32>
    %30 = arith.maximumf %28, %29 : vector<16x128xf32>
    %31 = arith.truncf %30 : vector<16x128xf32> to vector<16x128xbf16>
    %c0_15 = arith.constant 0 : index
    %c0_16 = arith.constant 0 : index
    %32 = vector.load %arg6[%c0_15, %c0_16] : memref<128x32xbf16, #tpu.memory_space<vmem>>, vector<128x32xbf16>
    %cst_17 = arith.constant dense<0.000000e+00> : vector<16x32xf32>
    %33 = tpu.matmul %31, %32, %cst_17 {dimension_numbers = #tpu.dot_dimension_numbers<[1], [0], [0], [1], [0, 0, 1, 1], [], []>} : vector<16x128xbf16>, vector<128x32xbf16>, vector<16x32xf32> -> vector<16x32xf32>
    %34 = arith.addf %0, %33 : vector<16x32xf32>
    %c0_18 = arith.constant 0 : index
    %c0_19 = arith.constant 0 : index
    %35 = vector.load %arg7[%c0_18, %c0_19] : memref<1x32xf32, #tpu.memory_space<vmem>>, vector<1x32xf32>
    %36 = vector.broadcast %35 : vector<1x32xf32> to vector<16x32xf32>
    %37 = arith.addf %34, %36 : vector<16x32xf32>
    %c0_20 = arith.constant 0 : index
    %c0_21 = arith.constant 0 : index
    %38 = vector.load %arg8[%c0_20, %c0_21] : memref<16x32xf32, #tpu.memory_space<vmem>>, vector<16x32xf32>
    tpu.vector_store %arg8[%c0_20, %c0_21], %37 {strides = array<i32>} : memref<16x32xf32, #tpu.memory_space<vmem>>, vector<16x32xf32>,
    return
  }
  func.func @transform_0(%arg0: i32) -> (i32, i32) {
    %c0_i32 = arith.constant 0 : i32
    %c0_i32_0 = arith.constant 0 : i32
    return %arg0, %c0_i32 : i32, i32
  }
  func.func @transform_1(%arg0: i32) -> (i32, i32) {
    %c0_i32 = arith.constant 0 : i32
    %c0_i32_0 = arith.constant 0 : i32
    %c0_i32_1 = arith.constant 0 : i32
    return %c0_i32, %c0_i32_0 : i32, i32
  }
  func.func @transform_2(%arg0: i32) -> (i32, i32) {
    %c0_i32 = arith.constant 0 : i32
    %c0_i32_0 = arith.constant 0 : i32
    %c0_i32_1 = arith.constant 0 : i32
    return %c0_i32, %c0_i32_0 : i32, i32
  }
  func.func @transform_3(%arg0: i32) -> (i32, i32) {
    %c0_i32 = arith.constant 0 : i32
    %c0_i32_0 = arith.constant 0 : i32
    %c0_i32_1 = arith.constant 0 : i32
    return %c0_i32, %c0_i32_0 : i32, i32
  }
  func.func @transform_4(%arg0: i32) -> (i32, i32) {
    %c0_i32 = arith.constant 0 : i32
    %c0_i32_0 = arith.constant 0 : i32
    %c0_i32_1 = arith.constant 0 : i32
    return %c0_i32, %c0_i32_0 : i32, i32
  }
  func.func @transform_5(%arg0: i32) -> (i32, i32) {
    %c0_i32 = arith.constant 0 : i32
    %c0_i32_0 = arith.constant 0 : i32
    %c0_i32_1 = arith.constant 0 : i32
    return %c0_i32, %c0_i32_0 : i32, i32
  }
  func.func @transform_6(%arg0: i32) -> (i32, i32) {
    %c0_i32 = arith.constant 0 : i32
    %c0_i32_0 = arith.constant 0 : i32
    %c0_i32_1 = arith.constant 0 : i32
    return %c0_i32, %c0_i32_0 : i32, i32
  }
  func.func @transform_7(%arg0: i32) -> (i32, i32) {
    %c0_i32 = arith.constant 0 : i32
    %c0_i32_0 = arith.constant 0 : i32
    return %arg0, %c0_i32 : i32, i32
  }
}

module attributes {stable_mosaic.version = 11 : i64} {
  func.func @_rotary_attn_kernel(%arg0: i32, %arg1: i32, %arg2: memref<1x8x96xbf16, #tpu.memory_space<vmem>>, %arg3: memref<1x8x32xf32, #tpu.memory_space<vmem>>, %arg4: memref<8x4xf32, #tpu.memory_space<vmem>>, %arg5: memref<8x4xf32, #tpu.memory_space<vmem>>, %arg6: memref<32x32xbf16, #tpu.memory_space<vmem>>, %arg7: memref<1x32xf32, #tpu.memory_space<vmem>>, %arg8: memref<1x8x32xf32, #tpu.memory_space<vmem>>) attributes {dimension_semantics = [#tpu.dimension_semantics<parallel>, #tpu.dimension_semantics<parallel>], iteration_bounds = array<i64: 2, 1>, scalar_prefetch = 0 : i64, scratch_operands = 0 : i64, tpu.core_type = #tpu.core_type<tc>, window_params = [{transform_indices = @transform_0, window_bounds = array<i64: 1, 8, 96>}, {transform_indices = @transform_1, window_bounds = array<i64: 1, 8, 32>}, {pipeline_mode = #tpu.pipeline_mode<synchronous>, transform_indices = @transform_2, window_bounds = array<i64: 8, 4>}, {pipeline_mode = #tpu.pipeline_mode<synchronous>, transform_indices = @transform_3, window_bounds = array<i64: 8, 4>}, {pipeline_mode = #tpu.pipeline_mode<synchronous>, transform_indices = @transform_4, window_bounds = array<i64: 32, 32>}, {pipeline_mode = #tpu.pipeline_mode<synchronous>, transform_indices = @transform_5, window_bounds = array<i64: 1, 32>}, {transform_indices = @transform_6, window_bounds = array<i64: 1, 8, 32>}]} {
    %c8_i32 = arith.constant 8 : i32
    %0 = arith.muli %arg1, %c8_i32 : i32
    %1 = tpu.assume_multiple %0, 8 : i32
    %c0 = arith.constant 0 : index
    %c0_0 = arith.constant 0 : index
    %2 = vector.load %arg4[%c0, %c0_0] : memref<8x4xf32, #tpu.memory_space<vmem>>, vector<8x4xf32>
    %c0_1 = arith.constant 0 : index
    %c0_2 = arith.constant 0 : index
    %3 = vector.load %arg5[%c0_1, %c0_2] : memref<8x4xf32, #tpu.memory_space<vmem>>, vector<8x4xf32>
    %4 = arith.index_cast %1 : i32 to index
    %c0_3 = arith.constant 0 : index
    %5 = vector.load %arg4[%4, %c0_3] : memref<8x4xf32, #tpu.memory_space<vmem>>, vector<8x4xf32>
    %6 = arith.index_cast %1 : i32 to index
    %c0_4 = arith.constant 0 : index
    %7 = vector.load %arg5[%6, %c0_4] : memref<8x4xf32, #tpu.memory_space<vmem>>, vector<8x4xf32>
    %c0_5 = arith.constant 0 : index
    %8 = arith.index_cast %1 : i32 to index
    %c0_6 = arith.constant 0 : index
    %9 = vector.load %arg2[%c0_5, %8, %c0_6] : memref<1x8x96xbf16, #tpu.memory_space<vmem>>, vector<1x8x96xbf16>
    %10 = vector.shape_cast %9 : vector<1x8x96xbf16> to vector<8x96xbf16>
    %c0_7 = arith.constant 0 : index
    %c0_8 = arith.constant 0 : index
    %c0_9 = arith.constant 0 : index
    %11 = vector.load %arg2[%c0_7, %c0_8, %c0_9] : memref<1x8x96xbf16, #tpu.memory_space<vmem>>, vector<1x8x96xbf16>
    %12 = vector.shape_cast %11 : vector<1x8x96xbf16> to vector<8x96xbf16>
    %c0_10 = arith.constant 0 : index
    %c0_11 = arith.constant 0 : index
    %c0_12 = arith.constant 0 : index
    %13 = vector.load %arg3[%c0_10, %c0_11, %c0_12] : memref<1x8x32xf32, #tpu.memory_space<vmem>>, vector<1x8x32xf32>
    %14 = vector.shape_cast %13 : vector<1x8x32xf32> to vector<8x32xf32>
    %c0_13 = arith.constant 0 : index
    %c0_14 = arith.constant 0 : index
    %15 = vector.load %arg7[%c0_13, %c0_14] : memref<1x32xf32, #tpu.memory_space<vmem>>, vector<1x32xf32>
    %16 = vector.broadcast %15 : vector<1x32xf32> to vector<8x32xf32>
    %17 = arith.addf %14, %16 : vector<8x32xf32>
    %18 = vector.extract_strided_slice %10 {offsets = [0, 0], sizes = [8, 4], strides = [1, 1]} : vector<8x96xbf16> to vector<8x4xbf16>
    %19 = arith.extf %18 : vector<8x4xbf16> to vector<8x4xf32>
    %cst = arith.constant 0.353553385 : f32
    %20 = vector.broadcast %cst : f32 to vector<8x4xf32>
    %21 = arith.mulf %19, %20 : vector<8x4xf32>
    %22 = vector.extract_strided_slice %10 {offsets = [0, 4], sizes = [8, 4], strides = [1, 1]} : vector<8x96xbf16> to vector<8x4xbf16>
    %23 = arith.extf %22 : vector<8x4xbf16> to vector<8x4xf32>
    %cst_15 = arith.constant 0.353553385 : f32
    %24 = vector.broadcast %cst_15 : f32 to vector<8x4xf32>
    %25 = arith.mulf %23, %24 : vector<8x4xf32>
    %26 = vector.extract_strided_slice %12 {offsets = [0, 32], sizes = [8, 4], strides = [1, 1]} : vector<8x96xbf16> to vector<8x4xbf16>
    %27 = arith.extf %26 : vector<8x4xbf16> to vector<8x4xf32>
    %28 = vector.extract_strided_slice %12 {offsets = [0, 36], sizes = [8, 4], strides = [1, 1]} : vector<8x96xbf16> to vector<8x4xbf16>
    %29 = arith.extf %28 : vector<8x4xbf16> to vector<8x4xf32>
    %30 = vector.extract_strided_slice %12 {offsets = [0, 64], sizes = [8, 8], strides = [1, 1]} : vector<8x96xbf16> to vector<8x8xbf16>
    %31 = arith.mulf %21, %5 : vector<8x4xf32>
    %32 = arith.mulf %25, %7 : vector<8x4xf32>
    %33 = arith.subf %31, %32 : vector<8x4xf32>
    %34 = arith.mulf %25, %5 : vector<8x4xf32>
    %35 = arith.mulf %21, %7 : vector<8x4xf32>
    %36 = arith.addf %34, %35 : vector<8x4xf32>
    %37 = tpu.concatenate %33, %36 in 1 : vector<8x4xf32>, vector<8x4xf32> -> vector<8x8xf32>
    %38 = arith.mulf %27, %2 : vector<8x4xf32>
    %39 = arith.mulf %29, %3 : vector<8x4xf32>
    %40 = arith.subf %38, %39 : vector<8x4xf32>
    %41 = arith.mulf %29, %2 : vector<8x4xf32>
    %42 = arith.mulf %27, %3 : vector<8x4xf32>
    %43 = arith.addf %41, %42 : vector<8x4xf32>
    %44 = tpu.concatenate %40, %43 in 1 : vector<8x4xf32>, vector<8x4xf32> -> vector<8x8xf32>
    %45 = arith.truncf %37 : vector<8x8xf32> to vector<8x8xbf16>
    %46 = arith.truncf %44 : vector<8x8xf32> to vector<8x8xbf16>
    %cst_16 = arith.constant dense<0.000000e+00> : vector<8x8xf32>
    %47 = tpu.matmul %45, %46, %cst_16 {dimension_numbers = #tpu.dot_dimension_numbers<[1], [1], [0], [0], [0, 0, 1, 0], [], []>} : vector<8x8xbf16>, vector<8x8xbf16>, vector<8x8xf32> -> vector<8x8xf32>
    %cst_17 = arith.constant dense<0xFF800000> : vector<8xf32>
    %48 = vector.multi_reduction <maximumf>, %47, %cst_17 [1] : vector<8x8xf32> to vector<8xf32>
    %49 = vector.shape_cast %48 : vector<8xf32> to vector<8x1xf32>
    %50 = vector.broadcast %49 : vector<8x1xf32> to vector<8x8xf32>
    %51 = arith.subf %47, %50 : vector<8x8xf32>
    %52 = math.exp %51 : vector<8x8xf32>
    %cst_18 = arith.constant dense<0.000000e+00> : vector<8xf32>
    %53 = vector.multi_reduction <add>, %52, %cst_18 [1] : vector<8x8xf32> to vector<8xf32>
    %54 = vector.shape_cast %53 : vector<8xf32> to vector<8x1xf32>
    %55 = tpu.reciprocal %54 {approx = true} : vector<8x1xf32> -> vector<8x1xf32>
    %56 = vector.broadcast %55 : vector<8x1xf32> to vector<8x8xf32>
    %57 = arith.mulf %52, %56 : vector<8x8xf32>
    %58 = arith.truncf %57 : vector<8x8xf32> to vector<8x8xbf16>
    %cst_19 = arith.constant dense<0.000000e+00> : vector<8x8xf32>
    %59 = tpu.matmul %58, %30, %cst_19 {dimension_numbers = #tpu.dot_dimension_numbers<[1], [0], [0], [1], [0, 0, 1, 1], [], []>} : vector<8x8xbf16>, vector<8x8xbf16>, vector<8x8xf32> -> vector<8x8xf32>
    %60 = arith.truncf %59 : vector<8x8xf32> to vector<8x8xbf16>
    %c0_20 = arith.constant 0 : index
    %c0_21 = arith.constant 0 : index
    %61 = vector.load %arg6[%c0_20, %c0_21] : memref<32x32xbf16, #tpu.memory_space<vmem>>, vector<8x32xbf16>
    %cst_22 = arith.constant dense<0.000000e+00> : vector<8x32xf32>
    %62 = tpu.matmul %60, %61, %cst_22 {dimension_numbers = #tpu.dot_dimension_numbers<[1], [0], [0], [1], [0, 0, 1, 1], [], []>} : vector<8x8xbf16>, vector<8x32xbf16>, vector<8x32xf32> -> vector<8x32xf32>
    %63 = arith.addf %17, %62 : vector<8x32xf32>
    %64 = vector.extract_strided_slice %10 {offsets = [0, 8], sizes = [8, 4], strides = [1, 1]} : vector<8x96xbf16> to vector<8x4xbf16>
    %65 = arith.extf %64 : vector<8x4xbf16> to vector<8x4xf32>
    %cst_23 = arith.constant 0.353553385 : f32
    %66 = vector.broadcast %cst_23 : f32 to vector<8x4xf32>
    %67 = arith.mulf %65, %66 : vector<8x4xf32>
    %68 = vector.extract_strided_slice %10 {offsets = [0, 12], sizes = [8, 4], strides = [1, 1]} : vector<8x96xbf16> to vector<8x4xbf16>
    %69 = arith.extf %68 : vector<8x4xbf16> to vector<8x4xf32>
    %cst_24 = arith.constant 0.353553385 : f32
    %70 = vector.broadcast %cst_24 : f32 to vector<8x4xf32>
    %71 = arith.mulf %69, %70 : vector<8x4xf32>
    %72 = vector.extract_strided_slice %12 {offsets = [0, 40], sizes = [8, 4], strides = [1, 1]} : vector<8x96xbf16> to vector<8x4xbf16>
    %73 = arith.extf %72 : vector<8x4xbf16> to vector<8x4xf32>
    %74 = vector.extract_strided_slice %12 {offsets = [0, 44], sizes = [8, 4], strides = [1, 1]} : vector<8x96xbf16> to vector<8x4xbf16>
    %75 = arith.extf %74 : vector<8x4xbf16> to vector<8x4xf32>
    %76 = vector.extract_strided_slice %12 {offsets = [0, 72], sizes = [8, 8], strides = [1, 1]} : vector<8x96xbf16> to vector<8x8xbf16>
    %77 = arith.mulf %67, %5 : vector<8x4xf32>
    %78 = arith.mulf %71, %7 : vector<8x4xf32>
    %79 = arith.subf %77, %78 : vector<8x4xf32>
    %80 = arith.mulf %71, %5 : vector<8x4xf32>
    %81 = arith.mulf %67, %7 : vector<8x4xf32>
    %82 = arith.addf %80, %81 : vector<8x4xf32>
    %83 = tpu.concatenate %79, %82 in 1 : vector<8x4xf32>, vector<8x4xf32> -> vector<8x8xf32>
    %84 = arith.mulf %73, %2 : vector<8x4xf32>
    %85 = arith.mulf %75, %3 : vector<8x4xf32>
    %86 = arith.subf %84, %85 : vector<8x4xf32>
    %87 = arith.mulf %75, %2 : vector<8x4xf32>
    %88 = arith.mulf %73, %3 : vector<8x4xf32>
    %89 = arith.addf %87, %88 : vector<8x4xf32>
    %90 = tpu.concatenate %86, %89 in 1 : vector<8x4xf32>, vector<8x4xf32> -> vector<8x8xf32>
    %91 = arith.truncf %83 : vector<8x8xf32> to vector<8x8xbf16>
    %92 = arith.truncf %90 : vector<8x8xf32> to vector<8x8xbf16>
    %cst_25 = arith.constant dense<0.000000e+00> : vector<8x8xf32>
    %93 = tpu.matmul %91, %92, %cst_25 {dimension_numbers = #tpu.dot_dimension_numbers<[1], [1], [0], [0], [0, 0, 1, 0], [], []>} : vector<8x8xbf16>, vector<8x8xbf16>, vector<8x8xf32> -> vector<8x8xf32>
    %cst_26 = arith.constant dense<0xFF800000> : vector<8xf32>
    %94 = vector.multi_reduction <maximumf>, %93, %cst_26 [1] : vector<8x8xf32> to vector<8xf32>
    %95 = vector.shape_cast %94 : vector<8xf32> to vector<8x1xf32>
    %96 = vector.broadcast %95 : vector<8x1xf32> to vector<8x8xf32>
    %97 = arith.subf %93, %96 : vector<8x8xf32>
    %98 = math.exp %97 : vector<8x8xf32>
    %cst_27 = arith.constant dense<0.000000e+00> : vector<8xf32>
    %99 = vector.multi_reduction <add>, %98, %cst_27 [1] : vector<8x8xf32> to vector<8xf32>
    %100 = vector.shape_cast %99 : vector<8xf32> to vector<8x1xf32>
    %101 = tpu.reciprocal %100 {approx = true} : vector<8x1xf32> -> vector<8x1xf32>
    %102 = vector.broadcast %101 : vector<8x1xf32> to vector<8x8xf32>
    %103 = arith.mulf %98, %102 : vector<8x8xf32>
    %104 = arith.truncf %103 : vector<8x8xf32> to vector<8x8xbf16>
    %cst_28 = arith.constant dense<0.000000e+00> : vector<8x8xf32>
    %105 = tpu.matmul %104, %76, %cst_28 {dimension_numbers = #tpu.dot_dimension_numbers<[1], [0], [0], [1], [0, 0, 1, 1], [], []>} : vector<8x8xbf16>, vector<8x8xbf16>, vector<8x8xf32> -> vector<8x8xf32>
    %106 = arith.truncf %105 : vector<8x8xf32> to vector<8x8xbf16>
    %c8 = arith.constant 8 : index
    %c0_29 = arith.constant 0 : index
    %107 = vector.load %arg6[%c8, %c0_29] : memref<32x32xbf16, #tpu.memory_space<vmem>>, vector<8x32xbf16>
    %cst_30 = arith.constant dense<0.000000e+00> : vector<8x32xf32>
    %108 = tpu.matmul %106, %107, %cst_30 {dimension_numbers = #tpu.dot_dimension_numbers<[1], [0], [0], [1], [0, 0, 1, 1], [], []>} : vector<8x8xbf16>, vector<8x32xbf16>, vector<8x32xf32> -> vector<8x32xf32>
    %109 = arith.addf %63, %108 : vector<8x32xf32>
    %110 = vector.extract_strided_slice %10 {offsets = [0, 16], sizes = [8, 4], strides = [1, 1]} : vector<8x96xbf16> to vector<8x4xbf16>
    %111 = arith.extf %110 : vector<8x4xbf16> to vector<8x4xf32>
    %cst_31 = arith.constant 0.353553385 : f32
    %112 = vector.broadcast %cst_31 : f32 to vector<8x4xf32>
    %113 = arith.mulf %111, %112 : vector<8x4xf32>
    %114 = vector.extract_strided_slice %10 {offsets = [0, 20], sizes = [8, 4], strides = [1, 1]} : vector<8x96xbf16> to vector<8x4xbf16>
    %115 = arith.extf %114 : vector<8x4xbf16> to vector<8x4xf32>
    %cst_32 = arith.constant 0.353553385 : f32
    %116 = vector.broadcast %cst_32 : f32 to vector<8x4xf32>
    %117 = arith.mulf %115, %116 : vector<8x4xf32>
    %118 = vector.extract_strided_slice %12 {offsets = [0, 48], sizes = [8, 4], strides = [1, 1]} : vector<8x96xbf16> to vector<8x4xbf16>
    %119 = arith.extf %118 : vector<8x4xbf16> to vector<8x4xf32>
    %120 = vector.extract_strided_slice %12 {offsets = [0, 52], sizes = [8, 4], strides = [1, 1]} : vector<8x96xbf16> to vector<8x4xbf16>
    %121 = arith.extf %120 : vector<8x4xbf16> to vector<8x4xf32>
    %122 = vector.extract_strided_slice %12 {offsets = [0, 80], sizes = [8, 8], strides = [1, 1]} : vector<8x96xbf16> to vector<8x8xbf16>
    %123 = arith.mulf %113, %5 : vector<8x4xf32>
    %124 = arith.mulf %117, %7 : vector<8x4xf32>
    %125 = arith.subf %123, %124 : vector<8x4xf32>
    %126 = arith.mulf %117, %5 : vector<8x4xf32>
    %127 = arith.mulf %113, %7 : vector<8x4xf32>
    %128 = arith.addf %126, %127 : vector<8x4xf32>
    %129 = tpu.concatenate %125, %128 in 1 : vector<8x4xf32>, vector<8x4xf32> -> vector<8x8xf32>
    %130 = arith.mulf %119, %2 : vector<8x4xf32>
    %131 = arith.mulf %121, %3 : vector<8x4xf32>
    %132 = arith.subf %130, %131 : vector<8x4xf32>
    %133 = arith.mulf %121, %2 : vector<8x4xf32>
    %134 = arith.mulf %119, %3 : vector<8x4xf32>
    %135 = arith.addf %133, %134 : vector<8x4xf32>
    %136 = tpu.concatenate %132, %135 in 1 : vector<8x4xf32>, vector<8x4xf32> -> vector<8x8xf32>
    %137 = arith.truncf %129 : vector<8x8xf32> to vector<8x8xbf16>
    %138 = arith.truncf %136 : vector<8x8xf32> to vector<8x8xbf16>
    %cst_33 = arith.constant dense<0.000000e+00> : vector<8x8xf32>
    %139 = tpu.matmul %137, %138, %cst_33 {dimension_numbers = #tpu.dot_dimension_numbers<[1], [1], [0], [0], [0, 0, 1, 0], [], []>} : vector<8x8xbf16>, vector<8x8xbf16>, vector<8x8xf32> -> vector<8x8xf32>
    %cst_34 = arith.constant dense<0xFF800000> : vector<8xf32>
    %140 = vector.multi_reduction <maximumf>, %139, %cst_34 [1] : vector<8x8xf32> to vector<8xf32>
    %141 = vector.shape_cast %140 : vector<8xf32> to vector<8x1xf32>
    %142 = vector.broadcast %141 : vector<8x1xf32> to vector<8x8xf32>
    %143 = arith.subf %139, %142 : vector<8x8xf32>
    %144 = math.exp %143 : vector<8x8xf32>
    %cst_35 = arith.constant dense<0.000000e+00> : vector<8xf32>
    %145 = vector.multi_reduction <add>, %144, %cst_35 [1] : vector<8x8xf32> to vector<8xf32>
    %146 = vector.shape_cast %145 : vector<8xf32> to vector<8x1xf32>
    %147 = tpu.reciprocal %146 {approx = true} : vector<8x1xf32> -> vector<8x1xf32>
    %148 = vector.broadcast %147 : vector<8x1xf32> to vector<8x8xf32>
    %149 = arith.mulf %144, %148 : vector<8x8xf32>
    %150 = arith.truncf %149 : vector<8x8xf32> to vector<8x8xbf16>
    %cst_36 = arith.constant dense<0.000000e+00> : vector<8x8xf32>
    %151 = tpu.matmul %150, %122, %cst_36 {dimension_numbers = #tpu.dot_dimension_numbers<[1], [0], [0], [1], [0, 0, 1, 1], [], []>} : vector<8x8xbf16>, vector<8x8xbf16>, vector<8x8xf32> -> vector<8x8xf32>
    %152 = arith.truncf %151 : vector<8x8xf32> to vector<8x8xbf16>
    %c16 = arith.constant 16 : index
    %c0_37 = arith.constant 0 : index
    %153 = vector.load %arg6[%c16, %c0_37] : memref<32x32xbf16, #tpu.memory_space<vmem>>, vector<8x32xbf16>
    %cst_38 = arith.constant dense<0.000000e+00> : vector<8x32xf32>
    %154 = tpu.matmul %152, %153, %cst_38 {dimension_numbers = #tpu.dot_dimension_numbers<[1], [0], [0], [1], [0, 0, 1, 1], [], []>} : vector<8x8xbf16>, vector<8x32xbf16>, vector<8x32xf32> -> vector<8x32xf32>
    %155 = arith.addf %109, %154 : vector<8x32xf32>
    %156 = vector.extract_strided_slice %10 {offsets = [0, 24], sizes = [8, 4], strides = [1, 1]} : vector<8x96xbf16> to vector<8x4xbf16>
    %157 = arith.extf %156 : vector<8x4xbf16> to vector<8x4xf32>
    %cst_39 = arith.constant 0.353553385 : f32
    %158 = vector.broadcast %cst_39 : f32 to vector<8x4xf32>
    %159 = arith.mulf %157, %158 : vector<8x4xf32>
    %160 = vector.extract_strided_slice %10 {offsets = [0, 28], sizes = [8, 4], strides = [1, 1]} : vector<8x96xbf16> to vector<8x4xbf16>
    %161 = arith.extf %160 : vector<8x4xbf16> to vector<8x4xf32>
    %cst_40 = arith.constant 0.353553385 : f32
    %162 = vector.broadcast %cst_40 : f32 to vector<8x4xf32>
    %163 = arith.mulf %161, %162 : vector<8x4xf32>
    %164 = vector.extract_strided_slice %12 {offsets = [0, 56], sizes = [8, 4], strides = [1, 1]} : vector<8x96xbf16> to vector<8x4xbf16>
    %165 = arith.extf %164 : vector<8x4xbf16> to vector<8x4xf32>
    %166 = vector.extract_strided_slice %12 {offsets = [0, 60], sizes = [8, 4], strides = [1, 1]} : vector<8x96xbf16> to vector<8x4xbf16>
    %167 = arith.extf %166 : vector<8x4xbf16> to vector<8x4xf32>
    %168 = vector.extract_strided_slice %12 {offsets = [0, 88], sizes = [8, 8], strides = [1, 1]} : vector<8x96xbf16> to vector<8x8xbf16>
    %169 = arith.mulf %159, %5 : vector<8x4xf32>
    %170 = arith.mulf %163, %7 : vector<8x4xf32>
    %171 = arith.subf %169, %170 : vector<8x4xf32>
    %172 = arith.mulf %163, %5 : vector<8x4xf32>
    %173 = arith.mulf %159, %7 : vector<8x4xf32>
    %174 = arith.addf %172, %173 : vector<8x4xf32>
    %175 = tpu.concatenate %171, %174 in 1 : vector<8x4xf32>, vector<8x4xf32> -> vector<8x8xf32>
    %176 = arith.mulf %165, %2 : vector<8x4xf32>
    %177 = arith.mulf %167, %3 : vector<8x4xf32>
    %178 = arith.subf %176, %177 : vector<8x4xf32>
    %179 = arith.mulf %167, %2 : vector<8x4xf32>
    %180 = arith.mulf %165, %3 : vector<8x4xf32>
    %181 = arith.addf %179, %180 : vector<8x4xf32>
    %182 = tpu.concatenate %178, %181 in 1 : vector<8x4xf32>, vector<8x4xf32> -> vector<8x8xf32>
    %183 = arith.truncf %175 : vector<8x8xf32> to vector<8x8xbf16>
    %184 = arith.truncf %182 : vector<8x8xf32> to vector<8x8xbf16>
    %cst_41 = arith.constant dense<0.000000e+00> : vector<8x8xf32>
    %185 = tpu.matmul %183, %184, %cst_41 {dimension_numbers = #tpu.dot_dimension_numbers<[1], [1], [0], [0], [0, 0, 1, 0], [], []>} : vector<8x8xbf16>, vector<8x8xbf16>, vector<8x8xf32> -> vector<8x8xf32>
    %cst_42 = arith.constant dense<0xFF800000> : vector<8xf32>
    %186 = vector.multi_reduction <maximumf>, %185, %cst_42 [1] : vector<8x8xf32> to vector<8xf32>
    %187 = vector.shape_cast %186 : vector<8xf32> to vector<8x1xf32>
    %188 = vector.broadcast %187 : vector<8x1xf32> to vector<8x8xf32>
    %189 = arith.subf %185, %188 : vector<8x8xf32>
    %190 = math.exp %189 : vector<8x8xf32>
    %cst_43 = arith.constant dense<0.000000e+00> : vector<8xf32>
    %191 = vector.multi_reduction <add>, %190, %cst_43 [1] : vector<8x8xf32> to vector<8xf32>
    %192 = vector.shape_cast %191 : vector<8xf32> to vector<8x1xf32>
    %193 = tpu.reciprocal %192 {approx = true} : vector<8x1xf32> -> vector<8x1xf32>
    %194 = vector.broadcast %193 : vector<8x1xf32> to vector<8x8xf32>
    %195 = arith.mulf %190, %194 : vector<8x8xf32>
    %196 = arith.truncf %195 : vector<8x8xf32> to vector<8x8xbf16>
    %cst_44 = arith.constant dense<0.000000e+00> : vector<8x8xf32>
    %197 = tpu.matmul %196, %168, %cst_44 {dimension_numbers = #tpu.dot_dimension_numbers<[1], [0], [0], [1], [0, 0, 1, 1], [], []>} : vector<8x8xbf16>, vector<8x8xbf16>, vector<8x8xf32> -> vector<8x8xf32>
    %198 = arith.truncf %197 : vector<8x8xf32> to vector<8x8xbf16>
    %c24 = arith.constant 24 : index
    %c0_45 = arith.constant 0 : index
    %199 = vector.load %arg6[%c24, %c0_45] : memref<32x32xbf16, #tpu.memory_space<vmem>>, vector<8x32xbf16>
    %cst_46 = arith.constant dense<0.000000e+00> : vector<8x32xf32>
    %200 = tpu.matmul %198, %199, %cst_46 {dimension_numbers = #tpu.dot_dimension_numbers<[1], [0], [0], [1], [0, 0, 1, 1], [], []>} : vector<8x8xbf16>, vector<8x32xbf16>, vector<8x32xf32> -> vector<8x32xf32>
    %201 = arith.addf %155, %200 : vector<8x32xf32>
    %c0_47 = arith.constant 0 : index
    %c0_48 = arith.constant 0 : index
    %c0_49 = arith.constant 0 : index
    %202 = vector.load %arg8[%c0_47, %c0_48, %c0_49] : memref<1x8x32xf32, #tpu.memory_space<vmem>>, vector<1x8x32xf32>
    %203 = vector.shape_cast %202 : vector<1x8x32xf32> to vector<8x32xf32>
    %204 = vector.shape_cast %201 : vector<8x32xf32> to vector<1x8x32xf32>
    tpu.vector_store %arg8[%c0_47, %c0_48, %c0_49], %204 {strides = array<i32>} : memref<1x8x32xf32, #tpu.memory_space<vmem>>, vector<1x8x32xf32>,
    return
  }
  func.func @transform_0(%arg0: i32, %arg1: i32) -> (i32, i32, i32) {
    %c0_i32 = arith.constant 0 : i32
    %c0_i32_0 = arith.constant 0 : i32
    %c0_i32_1 = arith.constant 0 : i32
    return %arg0, %c0_i32, %c0_i32_0 : i32, i32, i32
  }
  func.func @transform_1(%arg0: i32, %arg1: i32) -> (i32, i32, i32) {
    %c0_i32 = arith.constant 0 : i32
    %c0_i32_0 = arith.constant 0 : i32
    return %arg0, %arg1, %c0_i32 : i32, i32, i32
  }
  func.func @transform_2(%arg0: i32, %arg1: i32) -> (i32, i32) {
    %c0_i32 = arith.constant 0 : i32
    %c0_i32_0 = arith.constant 0 : i32
    %c0_i32_1 = arith.constant 0 : i32
    return %c0_i32, %c0_i32_0 : i32, i32
  }
  func.func @transform_3(%arg0: i32, %arg1: i32) -> (i32, i32) {
    %c0_i32 = arith.constant 0 : i32
    %c0_i32_0 = arith.constant 0 : i32
    %c0_i32_1 = arith.constant 0 : i32
    return %c0_i32, %c0_i32_0 : i32, i32
  }
  func.func @transform_4(%arg0: i32, %arg1: i32) -> (i32, i32) {
    %c0_i32 = arith.constant 0 : i32
    %c0_i32_0 = arith.constant 0 : i32
    %c0_i32_1 = arith.constant 0 : i32
    return %c0_i32, %c0_i32_0 : i32, i32
  }
  func.func @transform_5(%arg0: i32, %arg1: i32) -> (i32, i32) {
    %c0_i32 = arith.constant 0 : i32
    %c0_i32_0 = arith.constant 0 : i32
    %c0_i32_1 = arith.constant 0 : i32
    return %c0_i32, %c0_i32_0 : i32, i32
  }
  func.func @transform_6(%arg0: i32, %arg1: i32) -> (i32, i32, i32) {
    %c0_i32 = arith.constant 0 : i32
    %c0_i32_0 = arith.constant 0 : i32
    return %arg0, %arg1, %c0_i32 : i32, i32, i32
  }
}

</mosaic_0001>

<bundles_post_ra>
// kernel: rotary_transformer_encoder_layer_forward.3
= control target key start
LH: loop header
LB: loop body
LE: loop exit
PB: predicated region body
PF: predicated region fallthrough
CT: control target
= control target key end

     0   :  { %vm23_vm0 = vcmask 261120   ;;  %v181_v15 = vmov 0.0   ;;  %vm182_vm1 = vmmov 0   ;;  %vm145_vm2 = vcmask 781312   ;;  %s245_s0 = inlined_call_operand.vmem [shape: f32[16,32], index: 0, kind: input, shape index: {}]   ;;  %s246_s3 = inlined_call_operand.vmem [shape: bf16[32,96], index: 3, kind: input, shape index: {}]   ;;  %s247_s1 = inlined_call_operand.vmem [shape: f32[1,32], index: 1, kind: input, shape index: {}]   ;;  %s248_s2 = inlined_call_operand.vmem [shape: f32[1,32], index: 2, kind: input, shape index: {}]   ;;  %s249_s4 = inlined_call_operand.vmem [shape: f32[1,96], index: 4, kind: input, shape index: {}]   ;;  %s250_s5 = inlined_call_operand.vmem [shape: bf16[16,96], index: 5, kind: output, shape index: {}]  }
   0x1   :  { %v21_v0 = vld [vmem:[%s245_s0] sm:$0xff]  ;;  %v22_v1 = vld [vmem:[%s245_s0 + $0x8] sm:$0xff]  ;;  %165 = vmatprep.subr.bf16.mxu0 %v181_v15  ;;  %169 = vmatprep.mubr.msk.bf16.mxu0 %vm182_vm1, %v181_v15 }
   0x2   :  { %v24_v2 = vsel %vm23_vm0, %v21_v0, 0.0  ;;  %v27_v3 = vsel %vm23_vm0, %v22_v1, 0.0  ;;  %v175_v14 = vld [vmem:[%s246_s3] sm:$0xff]   ;;  %v176_v16 = vld [vmem:[%s246_s3 + $0x8] sm:$0xff]  }
   0x3   :  { %25 = vadd.xlane.f32.xlu0 %v24_v2  ;;  %166 = vmatpush3.bf16.msra.mxu0 %v175_v14  ;;  %v152_v25 = vld [vmem:[%s247_s1] ss:$0 sm:$0xff] }
   0x4   :  { %167 = vmatprep.subr.bf16.mxu0 %v181_v15  ;;  %v153_v29 = vld [vmem:[%s248_s2] ss:$0 sm:$0xff] }
   0x5   :  { %v154_v34 = vld [vmem:[%s249_s4] ss:$0 sm:$0xff] }
   0x7   :  { %28 = vadd.xlane.f32.xlu0 %v27_v3  ;;  %168 = vmatpush3.bf16.msra.mxu0 %v176_v16 }
  0x90   :  { %v26_v4 = vpop.xlane.xlu0 %25 }
  0x91   :  { %v31_v5 = vmul.f32 0.03125, %v26_v4 }
  0x93   :  { %v33_v6 = vsub.f32 %v21_v0, %v31_v5 }
  0x94   :  { %v29_v7 = vpop.xlane.xlu0 %28 }
  0x95   :  { %v32_v8 = vmul.f32 0.03125, %v29_v7  ;;  %v35_v9 = vmul.f32 %v33_v6, %v33_v6 }
  0x97   :  { %v34_v10 = vsub.f32 %v22_v1, %v32_v8  ;;  %v37_v11 = vsel %vm23_vm0, %v35_v9, 0.0 }
  0x98   :  { %38 = vadd.xlane.f32.xlu1 %v37_v11 }
  0x99   :  { %v36_v12 = vmul.f32 %v34_v10, %v34_v10 }
  0x9b   :  { %v40_v13 = vsel %vm23_vm0, %v36_v12, 0.0 }
  0x9c   :  { %41 = vadd.xlane.f32.xlu1 %v40_v13 }
 0x125   :  { %v39_v17 = vpop.xlane.xlu1 %38 }
 0x126   :  { %v43_v18 = vmul.f32 0.03125, %v39_v17 }
 0x128   :  { %v45_v19 = vadd.f32 1e-05, %v43_v18 }
 0x129   :  { %v42_v20 = vpop.xlane.xlu1 %41 }
 0x12a   :  { %177 = vrsqrt.f32 %v45_v19  ;;  %v44_v21 = vmul.f32 0.03125, %v42_v20 }
 0x12c   :  { %v46_v22 = vadd.f32 1e-05, %v44_v21 }
 0x12e   :  { %179 = vrsqrt.f32 %v46_v22 }
 0x134   :  { %v178_v23 = vpop.eup %177 }
 0x135   :  { %v49_v24 = vmul.f32 %v178_v23, %v33_v6 }
 0x137   :  { %v58_v28 = vmul.f32 %v152_v25, %v49_v24 }
 0x138   :  { %v180_v26 = vpop.eup %179 }
 0x139   :  { %v50_v27 = vmul.f32 %v180_v26, %v34_v10  ;;  %v67_v31 = vadd.f32 %v153_v29, %v58_v28 }
 0x13b   :  { %v59_v30 = vmul.f32 %v152_v25, %v50_v27 }
 0x13d   :  { %v68_v32 = vadd.f32 %v153_v29, %v59_v30 }
 0x13f   :  { %v69_v33 = vpack.c.bf16 %v68_v32, %v67_v31 }
 0x141   :  { %170 = vmatmul.mubr.msk.bf16.vlgmr.msra.gmra.mrb[0].mxu0 %vm23_vm0, %v69_v33 }
 0x214   :  { %v130_v35 = vpop.f32.mrb[0].mxu0 }
 0x215   :  { %v131_v36 = vadd.f32 %v154_v34, %v130_v35  ;;  %v171_v37 = vpop.f32.mrb[1].mxu0 }
 0x216   :  { %v133_v38 = vpop.f32.mrb[2].mxu0 }
 0x217   :  { %v160_v39 = vpack.c.bf16 %v131_v36, %v131_v36  ;;  %v134_v40 = vadd.f32 %v154_v34, %v133_v38  ;;  %v172_v41 = vpop.f32.mrb[3].mxu0 }
 0x219   :  { %146 = vst.msk [vmem:[%s250_s5] sm:$0xf] %vm145_vm2, %v160_v39  ;;  %v161_v42 = vpack.c.bf16 %v134_v40, %v134_v40 }
 0x21b   :  { %147 = vst.msk [vmem:[%s250_s5 + $0x4] sm:$0xf] %vm145_vm2, %v161_v42 }

// kernel: rotary_transformer_encoder_layer_forward.5
= control target key start
LH: loop header
LB: loop body
LE: loop exit
PB: predicated region body
PF: predicated region fallthrough
CT: control target
= control target key end

     0   :  { %vm29_vm0 = vcmask 261120   ;;  %v339_v15 = vmov 0.0   ;;  %vm340_vm1 = vmmov 0   ;;  %s452_s0 = inlined_call_operand.vmem [shape: f32[16,32], index: 0, kind: input, shape index: {}]   ;;  %s453_s3 = inlined_call_operand.vmem [shape: bf16[32,128], index: 3, kind: input, shape index: {}]   ;;  %s454_s5 = inlined_call_operand.vmem [shape: bf16[128,32], index: 5, kind: input, shape index: {}]   ;;  %s455_s1 = inlined_call_operand.vmem [shape: f32[1,32], index: 1, kind: input, shape index: {}]   ;;  %s456_s2 = inlined_call_operand.vmem [shape: f32[1,32], index: 2, kind: input, shape index: {}]   ;;  %s457_s4 = inlined_call_operand.vmem [shape: f32[1,128], index: 4, kind: input, shape index: {}]   ;;  %s458_s6 = inlined_call_operand.vmem [shape: f32[1,32], index: 6, kind: input, shape index: {}]   ;;  %s459_s7 = inlined_call_operand.vmem [shape: f32[16,32], index: 7, kind: output, shape index: {}]  }
   0x1   :  { %v384_v0 = vld [vmem:[%s452_s0] sm:$0xff]  ;;  %v389_v1 = vld [vmem:[%s452_s0 + $0x8] sm:$0xff]  ;;  %295 = vmatprep.subr.bf16.mxu0 %v339_v15  ;;  %303 = vmatprep.subr.bf16.mxu1 %v339_v15  ;;  %v329_v19 = vld [vmem:[%s454_s5 + $0x10] sm:$0xff]  }
   0x2   :  { %v30_v2 = vsel %vm29_vm0, %v384_v0, 0.0  ;;  %v33_v3 = vsel %vm29_vm0, %v389_v1, 0.0  ;;  %v325_v14 = vld [vmem:[%s453_s3] sm:$0xff]   ;;  %v326_v16 = vld [vmem:[%s453_s3 + $0x8] sm:$0xff]   ;;  %299 = vmatprep.mubr.msk.bf16.mxu0 %vm340_vm1, %v339_v15  ;;  %319 = vmatprep.mubr.msk.bf16.mxu1 %vm340_vm1, %v339_v15  ;;  %v330_v20 = vld [vmem:[%s454_s5 + $0x18] sm:$0xff]  }
   0x3   :  { %31 = vadd.xlane.f32.xlu0 %v30_v2  ;;  %296 = vmatpush3.bf16.msra.mxu0 %v325_v14  ;;  %v327_v17 = vld [vmem:[%s454_s5] sm:$0xff]   ;;  %v328_v18 = vld [vmem:[%s454_s5 + $0x8] sm:$0xff]   ;;  %v333_v40 = vld [vmem:[%s454_s5 + $0x30] sm:$0xff]  }
   0x4   :  { %297 = vmatprep.subr.bf16.mxu0 %v339_v15  ;;  %304 = vmatpush3.bf16.msra.mxu1 %v327_v17  ;;  %v331_v21 = vld [vmem:[%s454_s5 + $0x20] sm:$0xff]   ;;  %v332_v22 = vld [vmem:[%s454_s5 + $0x28] sm:$0xff]   ;;  %v334_v41 = vld [vmem:[%s454_s5 + $0x38] sm:$0xff]  }
   0x5   :  { %305 = vmatprep.subr.bf16.mxu1 %v339_v15  ;;  %v268_v31 = vld [vmem:[%s455_s1] ss:$0 sm:$0xff] }
   0x6   :  { %v269_v35 = vld [vmem:[%s456_s2] ss:$0 sm:$0xff] }
   0x7   :  { %34 = vadd.xlane.f32.xlu0 %v33_v3  ;;  %298 = vmatpush3.bf16.msra.mxu0 %v326_v16  ;;  %v270_v42 = vld [vmem:[%s457_s4] ss:$0 sm:$0xff] }
   0x8   :  { %306 = vmatpush3.bf16.msra.mxu1 %v328_v18  ;;  %v282_v53 = vld [vmem:[%s458_s6] ss:$0 sm:$0xff] }
   0x9   :  { %307 = vmatprep.subr.bf16.mxu1 %v339_v15 }
   0xc   :  { %308 = vmatpush3.bf16.msra.mxu1 %v329_v19 }
   0xd   :  { %309 = vmatprep.subr.bf16.mxu1 %v339_v15 }
  0x10   :  { %310 = vmatpush3.bf16.msra.mxu1 %v330_v20 }
  0x11   :  { %311 = vmatprep.subr.bf16.mxu1 %v339_v15 }
  0x14   :  { %312 = vmatpush3.bf16.msra.mxu1 %v331_v21 }
  0x15   :  { %313 = vmatprep.subr.bf16.mxu1 %v339_v15 }
  0x18   :  { %314 = vmatpush3.bf16.msra.mxu1 %v332_v22 }
  0x19   :  { %315 = vmatprep.subr.bf16.mxu1 %v339_v15 }
  0x1c   :  { %316 = vmatpush3.bf16.msra.mxu1 %v333_v40 }
  0x1d   :  { %317 = vmatprep.subr.bf16.mxu1 %v339_v15 }
  0x20   :  { %318 = vmatpush3.bf16.msra.mxu1 %v334_v41 }
  0x90   :  { %v32_v4 = vpop.xlane.xlu0 %31 }
  0x91   :  { %v37_v5 = vmul.f32 0.03125, %v32_v4 }
  0x93   :  { %v39_v6 = vsub.f32 %v384_v0, %v37_v5 }
  0x94   :  { %v35_v7 = vpop.xlane.xlu0 %34 }
  0x95   :  { %v38_v8 = vmul.f32 0.03125, %v35_v7  ;;  %v41_v9 = vmul.f32 %v39_v6, %v39_v6 }
  0x97   :  { %v40_v10 = vsub.f32 %v389_v1, %v38_v8  ;;  %v43_v11 = vsel %vm29_vm0, %v41_v9, 0.0 }
  0x98   :  { %44 = vadd.xlane.f32.xlu1 %v43_v11 }
  0x99   :  { %v42_v12 = vmul.f32 %v40_v10, %v40_v10 }
  0x9b   :  { %v46_v13 = vsel %vm29_vm0, %v42_v12, 0.0 }
  0x9c   :  { %47 = vadd.xlane.f32.xlu1 %v46_v13 }
 0x125   :  { %v45_v23 = vpop.xlane.xlu1 %44 }
 0x126   :  { %v49_v24 = vmul.f32 0.03125, %v45_v23 }
 0x128   :  { %v51_v25 = vadd.f32 1e-05, %v49_v24 }
 0x129   :  { %v48_v26 = vpop.xlane.xlu1 %47 }
 0x12a   :  { %335 = vrsqrt.f32 %v51_v25  ;;  %v50_v27 = vmul.f32 0.03125, %v48_v26 }
 0x12c   :  { %v52_v28 = vadd.f32 1e-05, %v50_v27 }
 0x12e   :  { %337 = vrsqrt.f32 %v52_v28 }
 0x134   :  { %v336_v29 = vpop.eup %335 }
 0x135   :  { %v55_v30 = vmul.f32 %v336_v29, %v39_v6 }
 0x137   :  { %v64_v34 = vmul.f32 %v268_v31, %v55_v30 }
 0x138   :  { %v338_v32 = vpop.eup %337 }
 0x139   :  { %v56_v33 = vmul.f32 %v338_v32, %v40_v10  ;;  %v73_v37 = vadd.f32 %v269_v35, %v64_v34 }
 0x13b   :  { %v65_v36 = vmul.f32 %v268_v31, %v56_v33 }
 0x13d   :  { %v74_v38 = vadd.f32 %v269_v35, %v65_v36 }
 0x13f   :  { %v75_v39 = vpack.c.bf16 %v74_v38, %v73_v37 }
 0x141   :  { %300 = vmatmul.mubr.msk.bf16.vlgmr.msra.gmra.mrb[0].mxu0 %vm29_vm0, %v75_v39 }
 0x214   :  { %v136_v43 = vpop.f32.mrb[0].mxu0 }
 0x215   :  { %v137_v44 = vadd.f32 %v270_v42, %v136_v43  ;;  %v301_v45 = vpop.f32.mrb[1].mxu0 }
 0x216   :  { %v139_v46 = vpop.f32.mrb[2].mxu0 }
 0x217   :  { %v140_v47 = vadd.f32 %v270_v42, %v139_v46  ;;  %v302_v48 = vpop.f32.mrb[3].mxu0  ;;  %v143_v49 = vmax.f32 %v137_v44, 0.0 }
 0x219   :  { %v144_v50 = vmax.f32 %v140_v47, 0.0 }
 0x21b   :  { %v145_v51 = vpack.c.bf16 %v144_v50, %v143_v49 }
 0x21d   :  { %320 = vmatmul.mubr.bf16.vlgmr.msra.gmra.mrb[0].mxu1 %v145_v51 }
 0x2f0   :  { %v244_v52 = vpop.f32.mrb[0].mxu1 }
 0x2f1   :  { %v251_v54 = vadd.f32 %v244_v52, %v384_v0  ;;  %v321_v55 = vpop.f32.mrb[1].mxu1 }
 0x2f2   :  { %v247_v56 = vpop.f32.mrb[2].mxu1 }
 0x2f3   :  { %v260_v57 = vadd.f32 %v282_v53, %v251_v54  ;;  %v252_v58 = vadd.f32 %v247_v56, %v389_v1  ;;  %v322_v59 = vpop.f32.mrb[3].mxu1 }
 0x2f5   :  { %262 = vst.msk [vmem:[%s459_s7] sm:$0xff] %vm29_vm0, %v260_v57  ;;  %v261_v60 = vadd.f32 %v282_v53, %v252_v58 }
 0x2f7   :  { %263 = vst.msk [vmem:[%s459_s7 + $0x8] sm:$0xff] %vm29_vm0, %v261_v60 }

// kernel: rotary_transformer_encoder_layer_forward.4
= control target key start
LH: loop header
LB: loop body
LE: loop exit
PB: predicated region body
PF: predicated region fallthrough
CT: control target
= control target key end

     0   :  { %s1639_s21 = smov 0   ;;  %s1641_s22 = smov 0   ;;  %s1904_s0 = inlined_call_operand.vmem [shape: bf16[2,8,96], index: 0, kind: input, shape index: {}]   ;;  %s1905_s1 = inlined_call_operand.vmem [shape: f32[2,8,32], index: 1, kind: input, shape index: {}]   ;;  %s1906_s2 = inlined_call_operand.vmem [shape: f32[8,4], index: 2, kind: input, shape index: {}]   ;;  %s1907_s3 = inlined_call_operand.vmem [shape: f32[8,4], index: 3, kind: input, shape index: {}]   ;;  %s1908_s4 = inlined_call_operand.vmem [shape: bf16[32,32], index: 4, kind: input, shape index: {}]   ;;  %s1909_s5 = inlined_call_operand.vmem [shape: f32[1,32], index: 5, kind: input, shape index: {}]   ;;  %s1910_s6 = inlined_call_operand.vmem [shape: f32[2,8,32], index: 6, kind: output, shape index: {}]  }
   0x1   :  { %s1643_s23 = smov 0  }
   0x2 LB: > { %s28_s24 = sadd.s32 1, %s1572_s22  ;;  %p1323_p0 = scmp.ge.s32.totalorder %s1576_s23, 1  ;;  %s1576_s23 = sphi %s1643_s23, %s16_s23   ;;  %s1572_s22 = sphi %s1641_s22, %s1912_s22   ;;  %s1568_s21 = sphi %s1639_s21, %s1911_s21  }
   0x3   : > { %p30_p1 = scmp.ge.s32.totalorder %s28_s24, 2  ;;  %p239_p2 = scmp.lt.s32.totalorder %s1576_s23, 3 }
   0x5   : > { %s1914_s24 = smov (%p30_p1, %s28_s24), 0  ;;  %p240_p3 = pnand %p1323_p0, %p239_p2 }
   0x6   : > { %v1660_v0 = vld [vmem:[%s1907_s3] sm:$0xff] (!%p240_p3)  ;;  %s1578_s29 = smov (!%p240_p3), 36   ;;  %s1579_s30 = smov (!%p240_p3), 32   ;;  %v1582_v13 = vmov (!%p240_p3), 0.0   ;;  %vm1583_vm0 = vmmov (!%p240_p3), 0   ;;  %vm343_vm1 = vcmask (!%p240_p3), 31744  }
   0x7   : > { %243 = sbr.rel (%p240_p3) target bundleno = 2412 (0x96c), region = 44  ;;  %v1665_v1 = vld [vmem:[%s1906_s2] sm:$0xff] (!%p240_p3)  ;;  %351 = vrot.lane.b32.xlu0 (!%p240_p3), %v1660_v0, %s1578_s29  ;;  %p277_p4 = scmp.lt.s32.totalorder (!%p240_p3), %s1568_s21, 1  ;;  %1367 = vmatprep.subr.bf16.mxu0 (!%p240_p3), %v1582_v13  ;;  %vm384_vm2 = vcmask (!%p240_p3), 64512   ;;  %vm451_vm3 = vcmask (!%p240_p3), 1043456   ;;  %vm1225_vm4 = vcmask (!%p240_p3), 261120  }
   0x8   : > { %346 = vrot.lane.b32.xlu1 (!%p240_p3), %v1665_v1, %s1579_s30  ;;  %s1580_s11 = smov (!%p240_p3), 124   ;;  %s1581_s12 = smov (!%p240_p3), 4   ;;  %1379 = vmatprep.subr.bf16.mxu1 (!%p240_p3), %v1582_v13 }
   0x9   : > { %1369 = vmatprep.mubr.msk.bf16.mxu0 (!%p240_p3), %vm1583_vm0, %v1582_v13  ;;  %1381 = vmatprep.mubr.msk.bf16.mxu1 (!%p240_p3), %vm1583_vm0, %v1582_v13  ;;  %s1584_s13 = smov (!%p240_p3), 96   ;;  %s1585_s14 = smov (!%p240_p3), 40  }
   0xa   : > { %s1586_s15 = smov (!%p240_p3), 12   ;;  %s1587_s16 = smov (!%p240_p3), 44  }
   0xb   : > { %364 = vrot.lane.b32.xlu0 (!%p240_p3), %v1660_v0, %s1579_s30  ;;  %s1588_s17 = smov (!%p240_p3), 8   ;;  %s1589_s18 = smov (!%p240_p3), 52  }
   0xc   : > { %360 = vrot.lane.b32.xlu1 (!%p240_p3), %v1665_v1, %s1578_s29  ;;  %s1590_s19 = smov (!%p240_p3), 48   ;;  %s1591_s20 = smov (!%p240_p3), 20  }
   0xd   : > { %s1592_s25 = smov (!%p240_p3), 16   ;;  %s1593_s26 = smov (!%p240_p3), 64  }
   0xe   : > { %s1916_s21 = smov (!%p277_p4, %s1568_s21), 1  ;;  %s1594_s27 = smov 88  }
   0xf   : > { %s1324_s7 = sshll.u32 %s1916_s21, 2  ;;  %s1595_s28 = smov 120  }
  0x10   : > { %s280_s10 = scalar_lea.vmem %s1904_s0, %s1324_s7  ;;  %s1596_s29 = smov 80  }
  0x11   : > { %v1677_v2 = vld [vmem:[%s280_s10] sm:$0xf]  ;;  %s1597_s30 = smov 112   ;;  %s1598_s7 = smov 60  }
  0x12   : > { %v1680_v3 = vunpack.c.l.bf16 %v1677_v2  ;;  %v307_v5 = vld [vmem:[%s280_s10] sm:$0xf]  ;;  %v1763_v60 = vcombine.low %v1677_v2, %v1677_v2  ;;  %s1599_s8 = smov 28   ;;  %s1600_s9 = smov 56  }
  0x13   : > { %v318_v7 = vunpack.c.l.bf16 %v307_v5  ;;  %s1601_s10 = smov 24  }
  0x15   : > { %v1688_v10 = vmul.f32 0.35355338, %v318_v7 }
  0x17   : > { %v337_v11 = vmul.f32 %v1688_v10, %v1660_v0  ;;  %v321_v29 = vmul.f32 %v1688_v10, %v1665_v1 }
  0x79   : > { %v352_v4 = vpop.permute.xlu0 %351 }
  0x7a   : > { %v354_v6 = vmul.f32 %v352_v4, %v1680_v3  ;;  %v347_v12 = vpop.permute.xlu1 %346 }
  0x7b   : > { %v349_v16 = vmul.f32 %v347_v12, %v1680_v3 }
  0x7c   : > { %356 = vrot.lane.b32.xlu0 %v354_v6, %s1580_s11 }
  0x7d   : > { %v365_v8 = vpop.permute.xlu0 %364 }
  0x7e   : > { %v367_v9 = vmul.f32 %v365_v8, %v1680_v3  ;;  %v361_v14 = vpop.permute.xlu1 %360 }
  0x7f   : > { %v363_v17 = vmul.f32 %v361_v14, %v1680_v3 }
  0x80   : > { %369 = vrot.lane.b32.xlu1 %v367_v9, %s1581_s12  ;;  %323 = vrot.lane.b32.xlu0 %v1660_v0, %s1581_s12 }
  0x84   : > { %333 = vrot.lane.b32.xlu0 %v1665_v1, %s1581_s12 }
  0x88   : > { %339 = vrot.lane.b32.xlu0 %v337_v11, %s1581_s12 }
  0x8c   : > { %596 = vrot.lane.b32.xlu0 %v1660_v0, %s1585_s14 }
  0x90   : > { %548 = vrot.lane.b32.xlu0 %v1660_v0, %s1586_s15 }
  0x94   : > { %561 = vrot.lane.b32.xlu0 %v1660_v0, %s1588_s17 }
  0x98   : > { %810 = vrot.lane.b32.xlu0 %v1660_v0, %s1589_s18 }
  0x9c   : > { %823 = vrot.lane.b32.xlu0 %v1660_v0, %s1590_s19 }
  0xa0   : > { %775 = vrot.lane.b32.xlu0 %v1660_v0, %s1591_s20 }
  0xa4   : > { %788 = vrot.lane.b32.xlu0 %v1660_v0, %s1592_s25 }
  0xa8   : > { %579 = vrot.lane.b32.xlu0 %v1665_v1, %s1585_s14 }
  0xac   : > { %592 = vrot.lane.b32.xlu0 %v1665_v1, %s1587_s16 }
  0xee   : > { %v357_v15 = vpop.permute.xlu0 %356 }
  0xef   : > { %v359_v19 = vsub.f32 %v349_v16, %v357_v15 }
  0xf2   : > { %v370_v18 = vpop.permute.xlu1 %369  ;;  %v324_v21 = vpop.permute.xlu0 %323 }
  0xf3   : > { %v372_v20 = vadd.f32 %v370_v18, %v363_v17  ;;  %v326_v23 = vmul.f32 %v324_v21, %v1688_v10 }
  0xf5   : > { %v1502_v22 = vpack.i.bf16 %v372_v20, %v359_v19 }
  0xf6   : > { %v334_v24 = vpop.permute.xlu0 %333 }
  0xf7   : > { %1503 = vrot.lane.b32.xlu1 %v1502_v22, %s1584_s13  ;;  %v336_v28 = vmul.f32 %v334_v24, %v1688_v10 }
  0xfa   : > { %v340_v30 = vpop.permute.xlu0 %339 }
  0xfb   : > { %328 = vrot.lane.b32.xlu1 %v326_v23, %s1580_s11  ;;  %v342_v34 = vadd.f32 %v340_v30, %v336_v28 }
  0xfe   : > { %v597_v41 = vpop.permute.xlu0 %596 }
  0xff   : > { %583 = vrot.lane.b32.xlu1 %v1660_v0, %s1587_s16  ;;  %v599_v56 = vmul.f32 %v597_v41, %v1680_v3 }
 0x102   : > { %v549_v42 = vpop.permute.xlu0 %548 }
 0x103   : > { %v551_v57 = vmul.f32 %v549_v42, %v1688_v10 }
 0x106   : > { %v562_v43 = vpop.permute.xlu0 %561 }
 0x107   : > { %v564_v44 = vmul.f32 %v562_v43, %v1688_v10 }
 0x10a   : > { %v811_v45 = vpop.permute.xlu0 %810 }
 0x10b   : > { %v813_v58 = vmul.f32 %v811_v45, %v1680_v3 }
 0x10e   : > { %v824_v46 = vpop.permute.xlu0 %823 }
 0x10f   : > { %v826_v47 = vmul.f32 %v824_v46, %v1680_v3 }
 0x112   : > { %v776_v48 = vpop.permute.xlu0 %775 }
 0x113   : > { %v778_v59 = vmul.f32 %v776_v48, %v1688_v10 }
 0x116   : > { %v789_v49 = vpop.permute.xlu0 %788 }
 0x117   : > { %v791_v50 = vmul.f32 %v789_v49, %v1688_v10 }
 0x11a   : > { %v580_v61 = vpop.permute.xlu0 %579 }
 0x11b   : > { %v582_v12 = vmul.f32 %v580_v61, %v1680_v3 }
 0x11e   : > { %v593_v62 = vpop.permute.xlu0 %592 }
 0x11f   : > { %v595_v15 = vmul.f32 %v593_v62, %v1680_v3 }
 0x169   : > { %v1504_v25 = vpop.permute.xlu1 %1503 }
 0x16a   : > { %v1506_v26 = vunpack.i.h.bf16 %v1504_v25  ;;  %v1505_v27 = vunpack.i.l.bf16 %v1504_v25 }
 0x16c   : > { %v381_v31 = vsel %vm343_vm1, %v1505_v27, %v1506_v26 }
 0x16d   : > { %v329_v32 = vpop.permute.xlu1 %328  ;;  %v383_v33 = vpack.c.bf16 %v381_v31, %v381_v31 }
 0x16e   : > { %v331_v35 = vsub.f32 %v321_v29, %v329_v32 }
 0x16f   : > { %v389_v36 = vsel %vm384_vm2, %v383_v33, 0 }
 0x170   : > { %1368 = vmatpush3.bf16.xpose.msra.mxu0 %v389_v36  ;;  %v344_v37 = vsel %vm343_vm1, %v331_v35, %v342_v34 }
 0x171   : > { %1373 = vmatprep.subr.bf16.mxu0 %v1582_v13  ;;  %v382_v38 = vpack.c.bf16 %v344_v37, %v344_v37  ;;  %v584_v39 = vpop.permute.xlu1 %583 }
 0x172   : > { %v586_v40 = vmul.f32 %v584_v39, %v1680_v3 }
 0x174   : > { %588 = vrot.lane.b32.xlu0 %v586_v40, %s1580_s11 }
 0x177   : > { %1370 = vmatmul.mubr.msk.bf16.vlgmr.msra.gmra.mrb[0].mxu0 %vm384_vm2, %v382_v38 }
 0x178   : > { %1375 = vmatprep.mubr.msk.bf16.mxu0 %vm1583_vm0, %v1582_v13  ;;  %544 = vrot.lane.b32.xlu0 %v1665_v1, %s1588_s17 }
 0x17c   : > { %557 = vrot.lane.b32.xlu0 %v1665_v1, %s1586_s15 }
 0x180   : > { %806 = vrot.lane.b32.xlu0 %v1665_v1, %s1590_s19 }
 0x184   : > { %819 = vrot.lane.b32.xlu0 %v1665_v1, %s1589_s18 }
 0x188   : > { %566 = vrot.lane.b32.xlu0 %v564_v44, %s1581_s12 }
 0x18c   : > { %828 = vrot.lane.b32.xlu0 %v826_v47, %s1581_s12 }
 0x190   : > { %784 = vrot.lane.b32.xlu0 %v1665_v1, %s1591_s20 }
 0x194   : > { %793 = vrot.lane.b32.xlu0 %v791_v50, %s1581_s12 }
 0x198   : > { %446 = vrot.lane.b32.xlu0 %v1763_v60, %s1593_s26 }
 0x1e6   : > { %v589_v63 = vpop.permute.xlu0 %588 }
 0x1e7   : > { %v591_v18 = vsub.f32 %v582_v12, %v589_v63  ;;  %v496_v12 = vld [vmem:[%s1908_s4] sm:$0xf] }
 0x1ea   : > { %v545_v4 = vpop.permute.xlu0 %544 }
 0x1eb   : > { %v547_v21 = vmul.f32 %v545_v4, %v1688_v10 }
 0x1ee   : > { %v558_v5 = vpop.permute.xlu0 %557 }
 0x1ef   : > { %v560_v19 = vmul.f32 %v558_v5, %v1688_v10 }
 0x1f2   : > { %v807_v6 = vpop.permute.xlu0 %806 }
 0x1f3   : > { %v809_v29 = vmul.f32 %v807_v6, %v1680_v3 }
 0x1f6   : > { %v820_v7 = vpop.permute.xlu0 %819 }
 0x1f7   : > { %v822_v26 = vmul.f32 %v820_v7, %v1680_v3 }
 0x1fa   : > { %v567_v8 = vpop.permute.xlu0 %566 }
 0x1fb   : > { %v569_v27 = vadd.f32 %v567_v8, %v560_v19 }
 0x1fe   : > { %v829_v9 = vpop.permute.xlu0 %828 }
 0x1ff   : > { %v831_v32 = vadd.f32 %v829_v9, %v822_v26 }
 0x202   : > { %v785_v11 = vpop.permute.xlu0 %784 }
 0x203   : > { %v787_v37 = vmul.f32 %v785_v11, %v1688_v10 }
 0x206   : > { %v794_v16 = vpop.permute.xlu0 %793 }
 0x207   : > { %v796_v41 = vadd.f32 %v794_v16, %v787_v37 }
 0x20a   : > { %v447_v23 = vpop.permute.xlu0 %446 }
 0x20b   : > { %v453_v24 = vsel %vm451_vm3, %v447_v23, 0 }
 0x20c   : > { %1374 = vmatpush3.bf16.msra.mxu0 %v453_v24 }
 0x20d   : > { %1385 = vmatprep.subr.bf16.mxu0 %v1582_v13 }
 0x24a   : > { %v425_v51 = vpop.f32.mrb[0].mxu0 }
 0x24b   : > { %v1371_v52 = vpop.f32.mrb[1].mxu0  ;;  %v431_v53 = vsel %vm384_vm2, %v425_v51, -inf }
 0x24c   : > { %432 = vmax.xlane.f32.xlu1 %v431_v53  ;;  %v428_v54 = vpop.f32.mrb[2].mxu0 }
 0x24d   : > { %v1372_v55 = vpop.f32.mrb[3].mxu0 }
 0x25d   : > { %601 = vrot.lane.b32.xlu1 %v599_v56, %s1581_s12 }
 0x261   : > { %553 = vrot.lane.b32.xlu1 %v551_v57, %s1580_s11 }
 0x265   : > { %815 = vrot.lane.b32.xlu1 %v813_v58, %s1580_s11 }
 0x269   : > { %771 = vrot.lane.b32.xlu1 %v1665_v1, %s1592_s25  ;;  %s1325_s25 = sshll.u32 %s1916_s21, 3 }
 0x26d   : > { %780 = vrot.lane.b32.xlu1 %v778_v59, %s1580_s11 }
 0x2d9   : > { %v433_v14 = vpop.xlane.xlu1 %432 }
 0x2da   : > { %v434_v2 = vsub.f32 %v425_v51, %v433_v14  ;;  %v501_v14 = vsel %vm451_vm3, %v496_v12, 0 }
 0x2db   : > { %1380 = vmatpush3.bf16.msra.mxu1 %v501_v14 }
 0x2dc   : > { %v435_v17 = vmul.f32 1.442695, %v434_v2  ;;  %1391 = vmatprep.subr.bf16.mxu1 %v1582_v13 }
 0x2dd   : > { %v602_v20 = vpop.permute.xlu1 %601 }
 0x2de   : > { %1538 = vpow2.f32 %v435_v17  ;;  %v604_v22 = vadd.f32 %v602_v20, %v595_v15 }
 0x2e0   : > { %v1507_v25 = vpack.i.bf16 %v604_v22, %v591_v18 }
 0x2e1   : > { %v554_v28 = vpop.permute.xlu1 %553 }
 0x2e2   : > { %1508 = vrot.lane.b32.xlu0 %v1507_v25, %s1594_s27  ;;  %v556_v30 = vsub.f32 %v547_v21, %v554_v28 }
 0x2e4   : > { %v1512_v31 = vpack.i.bf16 %v569_v27, %v556_v30 }
 0x2e5   : > { %v816_v33 = vpop.permute.xlu1 %815 }
 0x2e6   : > { %1513 = vrot.lane.b32.xlu0 %v1512_v31, %s1595_s28  ;;  %v818_v34 = vsub.f32 %v809_v29, %v816_v33  ;;  %s287_s28 = scalar_lea.vmem %s1905_s1, %s1325_s25 }
 0x2e8   : > { %v1539_v35 = vpop.eup %1538  ;;  %v1517_v36 = vpack.i.bf16 %v831_v32, %v818_v34 }
 0x2e9   : > { %v437_v38 = vsel %vm384_vm2, %v1539_v35, 0.0  ;;  %v772_v39 = vpop.permute.xlu1 %771 }
 0x2ea   : > { %438 = vadd.xlane.f32.xlu1 %v437_v38  ;;  %1518 = vrot.lane.b32.xlu0 %v1517_v36, %s1596_s29  ;;  %v774_v40 = vmul.f32 %v772_v39, %v1688_v10 }
 0x2ed   : > { %v781_v42 = vpop.permute.xlu1 %780 }
 0x2ee   : > { %v783_v43 = vsub.f32 %v774_v40, %v781_v42 }
 0x2f0   : > { %v1522_v44 = vpack.i.bf16 %v796_v41, %v783_v43 }
 0x2f2   : > { %1523 = vrot.lane.b32.xlu0 %v1522_v44, %s1597_s30 }
 0x2f6   : > { %1037 = vrot.lane.b32.xlu0 %v1660_v0, %s1598_s7 }
 0x2fa   : > { %1050 = vrot.lane.b32.xlu0 %v1660_v0, %s1600_s9 }
 0x2fb   : > { %1002 = vrot.lane.b32.xlu1 %v1660_v0, %s1599_s8 }
 0x2ff   : > { %1015 = vrot.lane.b32.xlu1 %v1660_v0, %s1601_s10 }
 0x303   : > { %1033 = vrot.lane.b32.xlu1 %v1665_v1, %s1600_s9 }
 0x307   : > { %1046 = vrot.lane.b32.xlu1 %v1665_v1, %s1598_s7 }
 0x354   : > { %v1509_v46 = vpop.permute.xlu0 %1508 }
 0x355   : > { %v1511_v47 = vunpack.i.h.bf16 %v1509_v46  ;;  %v1510_v48 = vunpack.i.l.bf16 %v1509_v46 }
 0x357   : > { %v613_v50 = vsel %vm343_vm1, %v1510_v48, %v1511_v47 }
 0x358   : > { %v1514_v49 = vpop.permute.xlu0 %1513  ;;  %v615_v54 = vpack.c.bf16 %v613_v50, %v613_v50 }
 0x359   : > { %v1516_v57 = vunpack.i.h.bf16 %v1514_v49  ;;  %v1515_v58 = vunpack.i.l.bf16 %v1514_v49 }
 0x35a   : > { %v620_v59 = vsel %vm384_vm2, %v615_v54, 0 }
 0x35b   : > { %v578_v62 = vsel %vm343_vm1, %v1515_v58, %v1516_v57 }
 0x35c   : > { %v1519_v51 = vpop.permute.xlu0 %1518  ;;  %v614_v5 = vpack.c.bf16 %v578_v62, %v578_v62 }
 0x35d   : > { %v1521_v55 = vunpack.i.h.bf16 %v1519_v51  ;;  %v1520_v56 = vunpack.i.l.bf16 %v1519_v51 }
 0x35f   : > { %v840_v61 = vsel %vm343_vm1, %v1520_v56, %v1521_v55 }
 0x360   : > { %v842_v4 = vpack.c.bf16 %v840_v61, %v840_v61 }
 0x362   : > { %v847_v8 = vsel %vm384_vm2, %v842_v4, 0 }
 0x364   : > { %v1524_v63 = vpop.permute.xlu0 %1523 }
 0x365   : > { %v1526_v6 = vunpack.i.h.bf16 %v1524_v63  ;;  %v1525_v7 = vunpack.i.l.bf16 %v1524_v63 }
 0x367   : > { %v805_v9 = vsel %vm343_vm1, %v1525_v7, %v1526_v6 }
 0x368   : > { %v841_v11 = vpack.c.bf16 %v805_v9, %v805_v9  ;;  %v1038_v2 = vpop.permute.xlu0 %1037 }
 0x369   : > { %v1040_v40 = vmul.f32 %v1038_v2, %v1680_v3 }
 0x36c   : > { %v1051_v15 = vpop.permute.xlu0 %1050 }
 0x36d   : > { %v1053_v16 = vmul.f32 %v1051_v15, %v1680_v3 }
 0x36f   : > { %1055 = vrot.lane.b32.xlu1 %v1053_v16, %s1581_s12 }
 0x373   : > { %998 = vrot.lane.b32.xlu1 %v1665_v1, %s1601_s10 }
 0x377   : > { %v439_v45 = vpop.xlane.xlu1 %438  ;;  %1011 = vrot.lane.b32.xlu1 %v1665_v1, %s1599_s8 }
 0x378   : > { %1540 = vrcp.f32 %v439_v45 }
 0x37b   : > { %v1003_v17 = vpop.permute.xlu1 %1002 }
 0x37c   : > { %v1005_v18 = vmul.f32 %v1003_v17, %v1688_v10 }
 0x37e   : > { %1007 = vrot.lane.b32.xlu1 %v1005_v18, %s1580_s11 }
 0x37f   : > { %v1016_v19 = vpop.permute.xlu1 %1015 }
 0x380   : > { %v1018_v20 = vmul.f32 %v1016_v19, %v1688_v10 }
 0x382   : > { %v1541_v52 = vpop.eup %1540  ;;  %1020 = vrot.lane.b32.xlu1 %v1018_v20, %s1581_s12  ;;  %s1603_s12 = smov 104  }
 0x383   : > { %v441_v53 = vmul.f32 %v1541_v52, %v1539_v35  ;;  %v1034_v1 = vpop.permute.xlu1 %1033 }
 0x384   : > { %v1036_v51 = vmul.f32 %v1034_v1, %v1680_v3 }
 0x385   : > { %v442_v0 = vpack.c.bf16 %v441_v53, %v441_v53 }
 0x386   : > { %901 = vrot.lane.b32.xlu1 %v1763_v60, %s1590_s19 }
 0x387   : > { %1376 = vmatmul.mubr.msk.bf16.vlgmr.msra.gmra.mrb[4].mxu0 %vm384_vm2, %v442_v0  ;;  %v1047_v30 = vpop.permute.xlu1 %1046 }
 0x388   : > { %1386 = vmatpush3.bf16.xpose.msra.mxu0 %v620_v59  ;;  %1387 = vmatprep.mubr.msk.bf16.mxu0 %vm1583_vm0, %v1582_v13  ;;  %v1049_v49 = vmul.f32 %v1047_v30, %v1680_v3 }
 0x389   : > { %1403 = vmatprep.subr.bf16.mxu0 %v1582_v13 }
 0x38f   : > { %1388 = vmatmul.mubr.msk.bf16.vlgmr.msra.gmra.mrb[8].mxu0 %vm384_vm2, %v614_v5 }
 0x390   : > { %1404 = vmatpush3.bf16.xpose.msra.mxu0 %v847_v8  ;;  %1405 = vmatprep.mubr.msk.bf16.mxu0 %vm1583_vm0, %v1582_v13 }
 0x391   : > { %1409 = vmatprep.subr.bf16.mxu0 %v1582_v13 }
 0x397   : > { %1406 = vmatmul.mubr.msk.bf16.vlgmr.msra.gmra.mrb[12].mxu0 %vm384_vm2, %v841_v11 }
 0x398   : > { %1411 = vmatprep.mubr.msk.bf16.mxu0 %vm1583_vm0, %v1582_v13 }
 0x3e1   : > { %v1056_v35 = vpop.permute.xlu1 %1055 }
 0x3e2   : > { %v1058_v53 = vadd.f32 %v1056_v35, %v1049_v49 }
 0x3e5   : > { %v999_v37 = vpop.permute.xlu1 %998 }
 0x3e6   : > { %v1001_v39 = vmul.f32 %v999_v37, %v1688_v10 }
 0x3e9   : > { %v1012_v38 = vpop.permute.xlu1 %1011 }
 0x3ea   : > { %v1014_v42 = vmul.f32 %v1012_v38, %v1688_v10 }
 0x3f0   : > { %v1008_v41 = vpop.permute.xlu1 %1007 }
 0x3f1   : > { %v1010_v43 = vsub.f32 %v1001_v39, %v1008_v41 }
 0x3f4   : > { %v1021_v44 = vpop.permute.xlu1 %1020 }
 0x3f5   : > { %v1023_v45 = vadd.f32 %v1021_v44, %v1014_v42 }
 0x3f7   : > { %v1532_v46 = vpack.i.bf16 %v1023_v45, %v1010_v43 }
 0x3f8   : > { %v902_v47 = vpop.permute.xlu1 %901 }
 0x3f9   : > { %v907_v48 = vsel %vm451_vm3, %v902_v47, 0 }
 0x3fa   : > { %1410 = vmatpush3.bf16.msra.mxu0 %v907_v48 }
 0x3fb   : > { %1421 = vmatprep.subr.bf16.mxu0 %v1582_v13 }
 0x45a   : > { %v489_v21 = vpop.f32.mrb[4].mxu0 }
 0x45b   : > { %v495_v22 = vpack.c.bf16 %v489_v21, %v489_v21  ;;  %v1377_v23 = vpop.f32.mrb[5].mxu0 }
 0x45c   : > { %v492_v24 = vpop.f32.mrb[6].mxu0 }
 0x45d   : > { %v1378_v25 = vpop.f32.mrb[7].mxu0  ;;  %1382 = vmatmul.mubr.msk.bf16.vlgmr.msra.gmra.mrb[0].mxu1 %vm384_vm2, %v495_v22 }
 0x45e   : > { %1393 = vmatprep.mubr.msk.bf16.mxu1 %vm1583_vm0, %v1582_v13 }
 0x462   : > { %v1825_v26 = vpop.f32.mrb[8].mxu0 }
 0x463   : > { %v1389_v27 = vpop.f32.mrb[9].mxu0  ;;  %v662_v58 = vsel %vm384_vm2, %v1825_v26, -inf }
 0x464   : > { %v659_v28 = vpop.f32.mrb[10].mxu0 }
 0x465   : > { %v1390_v29 = vpop.f32.mrb[11].mxu0 }
 0x46a   : > { %v883_v31 = vpop.f32.mrb[12].mxu0 }
 0x46b   : > { %v1407_v32 = vpop.f32.mrb[13].mxu0  ;;  %v889_v33 = vsel %vm384_vm2, %v883_v31, -inf }
 0x46c   : > { %890 = vmax.xlane.f32.xlu0 %v889_v33  ;;  %v886_v34 = vpop.f32.mrb[14].mxu0  ;;  %v723_v33 = vld [vmem:[%s1908_s4 + $0x4] sm:$0xf] }
 0x46d   : > { %v1408_v36 = vpop.f32.mrb[15].mxu0  ;;  %v728_v34 = vsel %vm451_vm3, %v723_v33, 0 }
 0x482   : > { %1042 = vrot.lane.b32.xlu0 %v1040_v40, %s1580_s11  ;;  %s1602_s11 = smov 72   ;;  %v950_v40 = vld [vmem:[%s1908_s4 + $0x8] sm:$0xf] }
 0x483   : > { %v955_v44 = vsel %vm451_vm3, %v950_v40, 0 }
 0x4f9   : > { %v891_v50 = vpop.xlane.xlu0 %890 }
 0x4fa   : > { %v892_v52 = vsub.f32 %v883_v31, %v891_v50 }
 0x4fc   : > { %v893_v10 = vmul.f32 1.442695, %v892_v52  ;;  %v1177_v52 = vld [vmem:[%s1908_s4 + $0xc] sm:$0xf] }
 0x4fd   : > { %v1043_v54 = vpop.permute.xlu0 %1042 }
 0x4fe   : > { %1542 = vpow2.f32 %v893_v10  ;;  %v1045_v55 = vsub.f32 %v1036_v51, %v1043_v54  ;;  %v1182_v54 = vsel %vm451_vm3, %v1177_v52, 0 }
 0x500   : > { %v1527_v56 = vpack.i.bf16 %v1058_v53, %v1045_v55 }
 0x502   : > { %1528 = vrot.lane.b32.xlu1 %v1527_v56, %s1602_s11 }
 0x506   : > { %1533 = vrot.lane.b32.xlu1 %v1532_v46, %s1603_s12 }
 0x508   : > { %v1543_v0 = vpop.eup %1542 }
 0x509   : > { %v895_v57 = vsel %vm384_vm2, %v1543_v0, 0.0 }
 0x50a   : > { %896 = vadd.xlane.f32.xlu0 %v895_v57 }
 0x52a   : > { %663 = vmax.xlane.f32.xlu1 %v662_v58 }
 0x574   : > { %v1529_v59 = vpop.permute.xlu1 %1528 }
 0x575   : > { %v1531_v61 = vunpack.i.h.bf16 %v1529_v59  ;;  %v1530_v62 = vunpack.i.l.bf16 %v1529_v59  ;;  %v1327_v59 = vld [vmem:[%s1909_s5] ss:$0 sm:$0xff] }
 0x577   : > { %v1067_v63 = vsel %vm343_vm1, %v1530_v62, %v1531_v61 }
 0x578   : > { %v1534_v6 = vpop.permute.xlu1 %1533  ;;  %v1069_v7 = vpack.c.bf16 %v1067_v63, %v1067_v63 }
 0x579   : > { %v1536_v9 = vunpack.i.h.bf16 %v1534_v6  ;;  %v1535_v11 = vunpack.i.l.bf16 %v1534_v6 }
 0x57a   : > { %v1074_v12 = vsel %vm384_vm2, %v1069_v7, 0 }
 0x57b   : > { %v1032_v14 = vsel %vm343_vm1, %v1535_v11, %v1536_v9 }
 0x57c   : > { %v1068_v2 = vpack.c.bf16 %v1032_v14, %v1032_v14 }
 0x597   : > { %v897_v3 = vpop.xlane.xlu0 %896 }
 0x598   : > { %1544 = vrcp.f32 %v897_v3  ;;  %v309_v3 = vld [vmem:[%s287_s28] sm:$0xff] }
 0x599   : > { %v317_v61 = vadd.f32 %v1327_v59, %v309_v3 }
 0x5a2   : > { %v1545_v4 = vpop.eup %1544 }
 0x5a3   : > { %v899_v5 = vmul.f32 %v1545_v4, %v1543_v0 }
 0x5a5   : > { %v900_v8 = vpack.c.bf16 %v899_v5, %v899_v5 }
 0x5a7   : > { %1412 = vmatmul.mubr.msk.bf16.vlgmr.msra.gmra.mrb[16].mxu0 %vm384_vm2, %v900_v8 }
 0x5a8   : > { %1422 = vmatpush3.bf16.xpose.msra.mxu0 %v1074_v12  ;;  %1423 = vmatprep.mubr.msk.bf16.mxu0 %vm1583_vm0, %v1582_v13 }
 0x5af   : > { %1424 = vmatmul.mubr.msk.bf16.vlgmr.msra.gmra.mrb[20].mxu0 %vm384_vm2, %v1068_v2 }
 0x5b7   : > { %v664_v15 = vpop.xlane.xlu1 %663 }
 0x5b8   : > { %v665_v16 = vsub.f32 %v1825_v26, %v664_v15 }
 0x5ba   : > { %v666_v17 = vmul.f32 1.442695, %v665_v16 }
 0x5bc   : > { %1546 = vpow2.f32 %v666_v17 }
 0x5c6   : > { %v1547_v18 = vpop.eup %1546 }
 0x5c7   : > { %v668_v19 = vsel %vm384_vm2, %v1547_v18, 0.0 }
 0x5c8   : > { %669 = vadd.xlane.f32.xlu0 %v668_v19 }
 0x5de   : > { %674 = vrot.lane.b32.xlu0 %v1763_v60, %s1600_s9  ;;  %s294_s9 = scalar_lea.vmem %s1910_s6, %s1325_s25 }
 0x5e2   : > { %1128 = vrot.lane.b32.xlu0 %v1763_v60, %s1585_s14 }
 0x655   : > { %v670_v20 = vpop.xlane.xlu0 %669 }
 0x656   : > { %1548 = vrcp.f32 %v670_v20 }
 0x659   : > { %v675_v21 = vpop.permute.xlu0 %674 }
 0x65a   : > { %v680_v22 = vsel %vm451_vm3, %v675_v21, 0 }
 0x65b   : > { %1392 = vmatpush3.bf16.msra.mxu1 %v680_v22 }
 0x65c   : > { %1397 = vmatprep.subr.bf16.mxu1 %v1582_v13 }
 0x65d   : > { %v1129_v47 = vpop.permute.xlu0 %1128 }
 0x65e   : > { %v1134_v49 = vsel %vm451_vm3, %v1129_v47, 0 }
 0x660   : > { %v1549_v23 = vpop.eup %1548 }
 0x661   : > { %v672_v24 = vmul.f32 %v1549_v23, %v1547_v18 }
 0x663   : > { %v673_v25 = vpack.c.bf16 %v672_v24, %v672_v24 }
 0x665   : > { %1394 = vmatmul.mubr.msk.bf16.vlgmr.msra.gmra.mrb[4].mxu1 %vm384_vm2, %v673_v25 }
 0x666   : > { %1399 = vmatprep.mubr.msk.bf16.mxu1 %vm1583_vm0, %v1582_v13  ;;  %1398 = vmatpush3.bf16.msra.mxu1 %v728_v34 }
 0x667   : > { %1415 = vmatprep.subr.bf16.mxu1 %v1582_v13 }
 0x67a   : > { %v943_v1 = vpop.f32.mrb[16].mxu0 }
 0x67b   : > { %v1413_v26 = vpop.f32.mrb[17].mxu0  ;;  %v949_v48 = vpack.c.bf16 %v943_v1, %v943_v1 }
 0x67c   : > { %v946_v27 = vpop.f32.mrb[18].mxu0 }
 0x67d   : > { %v1414_v60 = vpop.f32.mrb[19].mxu0 }
 0x682   : > { %v1110_v28 = vpop.f32.mrb[20].mxu0 }
 0x683   : > { %v1425_v29 = vpop.f32.mrb[21].mxu0  ;;  %v1116_v30 = vsel %vm384_vm2, %v1110_v28, -inf }
 0x684   : > { %1117 = vmax.xlane.f32.xlu1 %v1116_v30  ;;  %v1113_v31 = vpop.f32.mrb[22].mxu0 }
 0x685   : > { %v1426_v32 = vpop.f32.mrb[23].mxu0 }
 0x711   : > { %v1118_v35 = vpop.xlane.xlu1 %1117 }
 0x712   : > { %v1119_v36 = vsub.f32 %v1110_v28, %v1118_v35 }
 0x714   : > { %v1120_v37 = vmul.f32 1.442695, %v1119_v36 }
 0x716   : > { %1550 = vpow2.f32 %v1120_v37 }
 0x720   : > { %v1551_v38 = vpop.eup %1550 }
 0x721   : > { %v1122_v39 = vsel %vm384_vm2, %v1551_v38, 0.0 }
 0x722   : > { %1123 = vadd.xlane.f32.xlu1 %v1122_v39 }
 0x738   : > { %v716_v41 = vpop.f32.mrb[4].mxu1 }
 0x739   : > { %v722_v42 = vpack.c.bf16 %v716_v41, %v716_v41  ;;  %v1395_v43 = vpop.f32.mrb[5].mxu1 }
 0x73a   : > { %v719_v45 = vpop.f32.mrb[6].mxu1 }
 0x73b   : > { %v1396_v46 = vpop.f32.mrb[7].mxu1  ;;  %1400 = vmatmul.mubr.msk.bf16.vlgmr.msra.gmra.mrb[0].mxu1 %vm384_vm2, %v722_v42 }
 0x73c   : > { %1416 = vmatpush3.bf16.msra.mxu1 %v955_v44  ;;  %1417 = vmatprep.mubr.msk.bf16.mxu1 %vm1583_vm0, %v1582_v13 }
 0x73d   : > { %1427 = vmatprep.subr.bf16.mxu1 %v1582_v13 }
 0x747   : > { %1418 = vmatmul.mubr.msk.bf16.vlgmr.msra.gmra.mrb[0].mxu1 %vm384_vm2, %v949_v48 }
 0x748   : > { %1428 = vmatpush3.bf16.msra.mxu1 %v1134_v49  ;;  %1429 = vmatprep.mubr.msk.bf16.mxu1 %vm1583_vm0, %v1582_v13 }
 0x749   : > { %1433 = vmatprep.subr.bf16.mxu1 %v1582_v13 }
 0x7af   : > { %v1124_v50 = vpop.xlane.xlu1 %1123 }
 0x7b0   : > { %1552 = vrcp.f32 %v1124_v50 }
 0x7ba   : > { %v1553_v51 = vpop.eup %1552 }
 0x7bb   : > { %v1126_v53 = vmul.f32 %v1553_v51, %v1551_v38 }
 0x7bd   : > { %v1127_v10 = vpack.c.bf16 %v1126_v53, %v1126_v53 }
 0x7bf   : > { %1430 = vmatmul.mubr.msk.bf16.vlgmr.msra.gmra.mrb[8].mxu1 %vm384_vm2, %v1127_v10 }
 0x7c0   : > { %1434 = vmatpush3.bf16.msra.mxu1 %v1182_v54  ;;  %1435 = vmatprep.mubr.msk.bf16.mxu1 %vm1583_vm0, %v1582_v13 }
 0x892   : > { %v1170_v55 = vpop.f32.mrb[8].mxu1 }
 0x893   : > { %v1176_v56 = vpack.c.bf16 %v1170_v55, %v1170_v55  ;;  %v1431_v0 = vpop.f32.mrb[9].mxu1 }
 0x894   : > { %v1173_v57 = vpop.f32.mrb[10].mxu1 }
 0x895   : > { %v1432_v58 = vpop.f32.mrb[11].mxu1  ;;  %1436 = vmatmul.mubr.msk.bf16.vlgmr.msra.gmra.mrb[0].mxu1 %vm384_vm2, %v1176_v56 }
 0x968   : > { %v1218_v13 = vpop.f32.mrb[0].mxu1 }
 0x969   : > { %v1439_v62 = vadd.f32 %v1218_v13, %v317_v61  ;;  %v1437_v63 = vpop.f32.mrb[1].mxu1 }
 0x96a   : > { %v1221_v4 = vpop.f32.mrb[2].mxu1 }
 0x96b   : > { %1226 = vst.msk [vmem:[%s294_s9] sm:$0xff] %vm1225_vm4, %v1439_v62  ;;  %v1438_v5 = vpop.f32.mrb[3].mxu1 }
 0x96c PF: > { %s16_s23 = sadd.s32 1, %s1576_s23   ;;  %s1911_s21 = smov %s1572_s22 }
 0x96d   : > { %p13_p5 = scmp.ge.s32.totalorder %s16_s23, 4   ;;  %s1912_s22 = smov %s1914_s24 }
 0x96f   :  { %15 = sbr.rel (!%p13_p5) target bundleno = 2 (0x2), region = 80 }

</bundles_post_ra>
